<compile_context>
chip_gen: v7x
topology: tpu7x:2x2x1
jax: 0.10.0
libtpu: 0.0.40
codegen_flags: <defaults>
</compile_context>

<pallas_src>
import functools
import math

import jax
import jax.numpy as jnp
from jax import lax
from jax.experimental import pallas as pl
from jax.experimental.pallas import tpu as pltpu


# ----------------------------------------------------------------------------
# Fused kernel: projection + per-head attention + phi + attn@V + log stats
# ----------------------------------------------------------------------------
def _fused_attention_kernel(lengths_ref, hq_ref, hfull_ref, wq_ref, bq_ref,
                            wkv_ref, bkv_ref, a_ref,
                            o_ref, stats_ref, kv_ref, *,
                            num_heads, out_dim, alpha, log_alpha, tq):
    b = pl.program_id(0)
    qi = pl.program_id(1)
    length = lengths_ref[b]

    K, D = num_heads, out_dim
    KD = K * D
    n = hfull_ref.shape[0]

    # K/V projection once per batch (q-tile 0); held in bf16 VMEM scratch and
    # reused by every query tile of this batch (q axis is "arbitrary").
    @pl.when(qi == 0)
    def _():
        kv = (jnp.dot(hfull_ref[...], wkv_ref[...],
                      preferred_element_type=jnp.float32) + bkv_ref[...])
        kv_ref[...] = kv.astype(jnp.bfloat16)

    # Q projection for this query tile; 1/sqrt(D) is pre-folded into wq/bq.
    q = (jnp.dot(hq_ref[...], wq_ref[...],
                 preferred_element_type=jnp.float32)
         + bq_ref[...]).astype(jnp.bfloat16)                       # (TQ, K*D)

    # Padding masks from thin iotas (no NxN int32 temporaries).
    col = lax.broadcasted_iota(jnp.int32, (1, n), 1)
    row = lax.broadcasted_iota(jnp.int32, (tq, 1), 0) + qi * tq
    key_pad = col >= length            # (1, N):  padded key columns
    qry_pad = row >= length            # (TQ, 1): padded query rows

    # A^T rows for this query tile and the phi weight alpha**A_t (head indep.).
    a_t = a_ref[...].T                                             # (TQ, N)
    w_phi = jnp.exp(a_t * jnp.float32(log_alpha))                  # alpha ** A_t
    d1 = a_t == 1.0
    d2 = a_t > 1.0

    neg = jnp.float32(-1e30)           # finite mask value: avoids inf-inf NaNs

    pre_d1 = jnp.float32(0.0)
    pre_d2 = jnp.float32(0.0)
    post_d2 = jnp.float32(0.0)
    outs = []

    for j in range(K):                 # all heads inside one grid step
        qj = q[:, j * D:(j + 1) * D]                       # (TQ, D) bf16
        kj = kv_ref[:, j * D:(j + 1) * D]                  # (N, D)  bf16
        vj = kv_ref[:, KD + j * D:KD + (j + 1) * D]        # (N, D)  bf16

        # (TQ, N) scores; contract last dims of both -> no kj transpose.
        scores = lax.dot_general(qj, kj, (((1,), (1,)), ((), ())),
                                 preferred_element_type=jnp.float32)
        scores = jnp.where(key_pad, neg, scores)
        m = jnp.max(scores, axis=-1, keepdims=True)
        e = jnp.exp(scores - m)
        attn = e * pl.reciprocal(jnp.sum(e, axis=-1, keepdims=True), approx=True)
        attn = jnp.where(qry_pad, 0.0, attn)               # pre-phi attention
        attn_post = attn * w_phi                           # phi = attn * alpha**A_t

        # log_dict needs only masked scalar sums; accumulate per head (no (N,N)
        # carry across the unrolled loop).
        pre_d1 += jnp.sum(jnp.where(d1, attn, 0.0))
        pre_d2 += jnp.sum(jnp.where(d2, attn, 0.0))
        post_d2 += jnp.sum(jnp.where(d2, attn_post, 0.0))

        outs.append(jnp.dot(attn_post.astype(jnp.bfloat16), vj,
                            preferred_element_type=jnp.float32))

    # One lane-dense, full-width (TQ, K*D) store for all heads.
    o_ref[...] = jnp.concatenate(outs, axis=1).astype(o_ref.dtype)

    # Where A_t == 1, alpha**A_t == alpha, so post_d1 is a scalar multiply.
    post_d1 = jnp.float32(alpha) * pre_d1

    rid = lax.broadcasted_iota(jnp.int32, (8, 128), 0)
    stats_ref[...] = (jnp.where(rid == 0, pre_d1, 0.0)
                      + jnp.where(rid == 1, pre_d2, 0.0)
                      + jnp.where(rid == 2, post_d1, 0.0)
                      + jnp.where(rid == 3, post_d2, 0.0))


def _pick_query_tile(n):
    # Largest 128-multiple tile that divides N (VMEM-safe on v7x's 64 MiB too);
    # small / odd graphs keep the full extent (still legal block shapes).
    for tqc in (256, 128):
        if n % tqc == 0:
            return tqc
    return n


# ----------------------------------------------------------------------------
# Wrapper: full forward pass
# ----------------------------------------------------------------------------
def adjacency_attention(h, A, lengths, alpha, params, out_dim, num_heads):
    assert alpha > 0.0, "phi uses alpha**A_t; alpha must be > 0"
    if h.ndim == 2:
        h = h[None]
        A = A[None]
    B, N, Din = h.shape
    D, K = out_dim, num_heads
    KD = K * D

    TQ = _pick_query_tile(N)
    QT = N // TQ

    # Fold 1/sqrt(D) into the Q projection; ship MXU operands as bf16.
    scale = 1.0 / math.sqrt(out_dim)
    w_q = (params["Wq"] * scale).astype(jnp.bfloat16)                 # (Din, KD)
    b_q = (params["bq"] * scale).reshape(1, KD).astype(jnp.float32)
    w_kv = jnp.concatenate([params["Wk"], params["Wv"]], axis=1).astype(jnp.bfloat16)
    b_kv = jnp.concatenate([params["bk"], params["bv"]]).reshape(1, 2 * KD).astype(jnp.float32)

    h_bf = h.astype(jnp.bfloat16)
    a_f = A.astype(jnp.float32)

    kernel = functools.partial(
        _fused_attention_kernel,
        num_heads=K, out_dim=D,
        alpha=float(alpha), log_alpha=float(math.log(alpha)), tq=TQ)

    out, stats = pl.pallas_call(
        kernel,
        out_shape=(
            jax.ShapeDtypeStruct((B, N, KD), jnp.float32),      # lane-dense h_heads
            jax.ShapeDtypeStruct((B, QT, 8, 128), jnp.float32),  # per (b, q-tile) stats
        ),
        grid_spec=pltpu.PrefetchScalarGridSpec(
            num_scalar_prefetch=1,                               # lengths -> SMEM
            grid=(B, QT),
            in_specs=[
                pl.BlockSpec((None, TQ, Din), lambda b, q, lens: (b, q, 0)),   # h (Q rows)
                pl.BlockSpec((None, N, Din), lambda b, q, lens: (b, 0, 0)),    # h (K/V rows)
                pl.BlockSpec((Din, KD), lambda b, q, lens: (0, 0)),            # Wq * scale
                pl.BlockSpec((1, KD), lambda b, q, lens: (0, 0)),              # bq * scale
                pl.BlockSpec((Din, 2 * KD), lambda b, q, lens: (0, 0)),        # [Wk|Wv]
                pl.BlockSpec((1, 2 * KD), lambda b, q, lens: (0, 0)),          # [bk|bv]
                pl.BlockSpec((None, N, TQ), lambda b, q, lens: (b, 0, q)),     # A columns
            ],
            out_specs=[
                pl.BlockSpec((None, TQ, KD), lambda b, q, lens: (b, q, 0)),
                pl.BlockSpec((None, None, 8, 128), lambda b, q, lens: (b, q, 0, 0)),
            ],
            scratch_shapes=[pltpu.VMEM((N, 2 * KD), jnp.bfloat16)],   # K/V per batch
        ),
        compiler_params=pltpu.CompilerParams(
            dimension_semantics=("parallel", "arbitrary"),
            vmem_limit_bytes=48 * 1024 * 1024),
    )(lengths.astype(jnp.int32), h_bf, h_bf, w_q, b_q, w_kv, b_kv, a_f)

    # [B, N, K*D] -> [B, K, N, D] (module API layout); single small transpose.
    # TODO(synk): drop this if the consumer accepts the lane-dense [B, N, K*D].
    h_heads = jnp.transpose(out.reshape(B, N, K, D), (0, 2, 1, 3))

    # log_dict glue (matches PyTorch boolean-indexed means over [K, B, N, N]).
    sums = jnp.sum(stats[:, :, :4, 0], axis=(0, 1))   # (4,): sums over batch & q-tiles
    cnt_d1 = K * jnp.sum(A == 1.0)                    # |A_t==1| == |A==1|
    cnt_d2 = K * jnp.sum(A > 1.0)
    log_dict = {
        "attention/attention_pre_transform_d1":
            (sums[0] / cnt_d1.astype(jnp.float32), cnt_d1),
        "attention/attention_pre_transform_d2+":
            (sums[1] / cnt_d2.astype(jnp.float32), cnt_d2),
        "attention/attention_post_transform_d1":
            (sums[2] / cnt_d1.astype(jnp.float32), cnt_d1),
        "attention/attention_post_transform_d2+":
            (sums[3] / cnt_d2.astype(jnp.float32), cnt_d2),
    }
    return h_heads, log_dict


# ----------------------------------------------------------------------------
# Pure-JAX reference (for correctness check)
# ----------------------------------------------------------------------------
def reference(h, A, lengths, alpha, params, out_dim, num_heads):
    B, N, _ = h.shape
    D, K = out_dim, num_heads

    def proj(w, b):
        x = h @ w + b
        return jnp.transpose(x.reshape(B, N, K, D), (0, 2, 1, 3))

    Qh = proj(params["Wq"], params["bq"])
    Kh = proj(params["Wk"], params["bk"])
    Vh = proj(params["Wv"], params["bv"])

    attn = jnp.einsum("bknd,bkmd->bknm", Qh, Kh)
    key_pad = jnp.arange(N)[None, :] >= lengths[:, None]          # [B, N]
    attn = jnp.where(key_pad[:, None, None, :], -jnp.inf, attn)
    attn = jax.nn.softmax(attn / jnp.sqrt(jnp.float32(out_dim)), axis=-1)
    attn = jnp.where(key_pad[:, None, :, None], 0.0, attn)        # pre-phi

    A_t = jnp.swapaxes(A, -1, -2).astype(jnp.float32)
    w_phi = jnp.exp(A_t * math.log(alpha))[:, None]
    attn_post = attn * w_phi                                      # post-phi

    d1 = (A_t == 1.0)[:, None]
    d2 = (A_t > 1.0)[:, None]
    c1 = K * jnp.sum(A_t == 1.0)
    c2 = K * jnp.sum(A_t > 1.0)
    logs = {
        "attention/attention_pre_transform_d1": jnp.sum(jnp.where(d1, attn, 0.0)) / c1,
        "attention/attention_pre_transform_d2+": jnp.sum(jnp.where(d2, attn, 0.0)) / c2,
        "attention/attention_post_transform_d1": jnp.sum(jnp.where(d1, attn_post, 0.0)) / c1,
        "attention/attention_post_transform_d2+": jnp.sum(jnp.where(d2, attn_post, 0.0)) / c2,
    }
    h_heads = jnp.einsum("bknm,bkmd->bknd", attn_post, Vh)
    return h_heads, logs


# ----------------------------------------------------------------------------
if __name__ == "__main__":
    B, N, in_dim, out_dim, num_heads = 2, 8, 16, 16, 4
    alpha = 0.5

    key = jax.random.PRNGKey(0)
    ks = jax.random.split(key, 8)
    bound = 1.0 / math.sqrt(in_dim)
    KD = out_dim * num_heads
    params = {
        "Wq": jax.random.uniform(ks[0], (in_dim, KD), jnp.float32, -bound, bound),
        "bq": jax.random.uniform(ks[1], (KD,), jnp.float32, -bound, bound),
        "Wk": jax.random.uniform(ks[2], (in_dim, KD), jnp.float32, -bound, bound),
        "bk": jax.random.uniform(ks[3], (KD,), jnp.float32, -bound, bound),
        "Wv": jax.random.uniform(ks[4], (in_dim, KD), jnp.float32, -bound, bound),
        "bv": jax.random.uniform(ks[5], (KD,), jnp.float32, -bound, bound),
    }

    h = jax.random.normal(ks[6], (B, N, in_dim), jnp.float32)
    # A holds small integer hop distances (0..3), as consumed by phi.
    A = jax.random.randint(ks[7], (B, N, N), 0, 4).astype(jnp.float32)
    lengths = jnp.array([N, 5], dtype=jnp.int32)

    h_heads, log_dict = adjacency_attention(
        h, A, lengths, alpha, params, out_dim, num_heads)
    h_heads = jax.block_until_ready(h_heads)
    jax.block_until_ready(log_dict)

    ref_out, ref_logs = reference(h, A, lengths, alpha, params, out_dim, num_heads)
    assert h_heads.shape == (B, num_heads, N, out_dim), h_heads.shape
    # bf16 MXU operands (f32 accumulate) -> loosened tolerances vs. pure-f32 ref.
    assert jnp.allclose(h_heads, ref_out, atol=3e-2, rtol=3e-2), "h_heads mismatch"
    for name, ref_mean in ref_logs.items():
        mean, _count = log_dict[name]
        assert jnp.allclose(mean, ref_mean, atol=3e-2, rtol=3e-2), f"{name} mismatch"

    print("KERNEL_OK")
</pallas_src>

<mosaic_0001>
module attributes {stable_mosaic.version = 11 : i64} {
  func.func @_fused_attention_kernel(%arg0: i32, %arg1: i32, %arg2: memref<2xi32, #tpu.memory_space<smem>>, %arg3: memref<1x8x16xbf16, #tpu.memory_space<vmem>>, %arg4: memref<1x8x16xbf16, #tpu.memory_space<vmem>>, %arg5: memref<16x64xbf16, #tpu.memory_space<vmem>>, %arg6: memref<1x64xf32, #tpu.memory_space<vmem>>, %arg7: memref<16x128xbf16, #tpu.memory_space<vmem>>, %arg8: memref<1x128xf32, #tpu.memory_space<vmem>>, %arg9: memref<1x8x8xf32, #tpu.memory_space<vmem>>, %arg10: memref<1x8x64xf32, #tpu.memory_space<vmem>>, %arg11: memref<1x1x8x128xf32, #tpu.memory_space<vmem>>, %arg12: memref<8x128xbf16, #tpu.memory_space<vmem>>) attributes {dimension_semantics = [#tpu.dimension_semantics<parallel>, #tpu.dimension_semantics<arbitrary>], iteration_bounds = array<i64: 2, 1>, scalar_prefetch = 1 : i64, scratch_operands = 1 : i64, tpu.core_type = #tpu.core_type<tc>, window_params = [{transform_indices = @transform_0, window_bounds = array<i64: 1, 8, 16>}, {transform_indices = @transform_1, window_bounds = array<i64: 1, 8, 16>}, {pipeline_mode = #tpu.pipeline_mode<synchronous>, transform_indices = @transform_2, window_bounds = array<i64: 16, 64>}, {pipeline_mode = #tpu.pipeline_mode<synchronous>, transform_indices = @transform_3, window_bounds = array<i64: 1, 64>}, {pipeline_mode = #tpu.pipeline_mode<synchronous>, transform_indices = @transform_4, window_bounds = array<i64: 16, 128>}, {pipeline_mode = #tpu.pipeline_mode<synchronous>, transform_indices = @transform_5, window_bounds = array<i64: 1, 128>}, {transform_indices = @transform_6, window_bounds = array<i64: 1, 8, 8>}, {transform_indices = @transform_7, window_bounds = array<i64: 1, 8, 64>}, {transform_indices = @transform_8, window_bounds = array<i64: 1, 1, 8, 128>}]} {
    %0 = arith.index_cast %arg0 : i32 to index
    %1 = memref.load %arg2[%0] : memref<2xi32, #tpu.memory_space<smem>>
    %c0_i32 = arith.constant 0 : i32
    %2 = arith.cmpi eq, %arg1, %c0_i32 : i32
    %3 = arith.extui %2 : i1 to i32
    %c0_i32_0 = arith.constant 0 : i32
    %4 = arith.cmpi ne, %3, %c0_i32_0 : i32
    scf.if %4 {
      %c0_86 = arith.constant 0 : index
      %c0_87 = arith.constant 0 : index
      %c0_88 = arith.constant 0 : index
      %248 = vector.load %arg4[%c0_86, %c0_87, %c0_88] : memref<1x8x16xbf16, #tpu.memory_space<vmem>>, vector<1x8x16xbf16>
      %249 = vector.shape_cast %248 : vector<1x8x16xbf16> to vector<8x16xbf16>
      %c0_89 = arith.constant 0 : index
      %c0_90 = arith.constant 0 : index
      %250 = vector.load %arg7[%c0_89, %c0_90] : memref<16x128xbf16, #tpu.memory_space<vmem>>, vector<16x128xbf16>
      %cst_91 = arith.constant dense<0.000000e+00> : vector<8x128xf32>
      %251 = tpu.matmul %249, %250, %cst_91 {dimension_numbers = #tpu.dot_dimension_numbers<[1], [0], [0], [1], [0, 0, 1, 1], [], []>} : vector<8x16xbf16>, vector<16x128xbf16>, vector<8x128xf32> -> vector<8x128xf32>
      %c0_92 = arith.constant 0 : index
      %c0_93 = arith.constant 0 : index
      %252 = vector.load %arg8[%c0_92, %c0_93] : memref<1x128xf32, #tpu.memory_space<vmem>>, vector<1x128xf32>
      %253 = vector.broadcast %252 : vector<1x128xf32> to vector<8x128xf32>
      %254 = arith.addf %251, %253 : vector<8x128xf32>
      %255 = arith.truncf %254 : vector<8x128xf32> to vector<8x128xbf16>
      %c0_94 = arith.constant 0 : index
      %c0_95 = arith.constant 0 : index
      %256 = vector.load %arg12[%c0_94, %c0_95] : memref<8x128xbf16, #tpu.memory_space<vmem>>, vector<8x128xbf16>
      tpu.vector_store %arg12[%c0_94, %c0_95], %255 {strides = array<i32>} : memref<8x128xbf16, #tpu.memory_space<vmem>>, vector<8x128xbf16>,
    } else {
    }
    %c0 = arith.constant 0 : index
    %c0_1 = arith.constant 0 : index
    %c0_2 = arith.constant 0 : index
    %5 = vector.load %arg3[%c0, %c0_1, %c0_2] : memref<1x8x16xbf16, #tpu.memory_space<vmem>>, vector<1x8x16xbf16>
    %6 = vector.shape_cast %5 : vector<1x8x16xbf16> to vector<8x16xbf16>
    %c0_3 = arith.constant 0 : index
    %c0_4 = arith.constant 0 : index
    %7 = vector.load %arg5[%c0_3, %c0_4] : memref<16x64xbf16, #tpu.memory_space<vmem>>, vector<16x64xbf16>
    %cst = arith.constant dense<0.000000e+00> : vector<8x64xf32>
    %8 = tpu.matmul %6, %7, %cst {dimension_numbers = #tpu.dot_dimension_numbers<[1], [0], [0], [1], [0, 0, 1, 1], [], []>} : vector<8x16xbf16>, vector<16x64xbf16>, vector<8x64xf32> -> vector<8x64xf32>
    %c0_5 = arith.constant 0 : index
    %c0_6 = arith.constant 0 : index
    %9 = vector.load %arg6[%c0_5, %c0_6] : memref<1x64xf32, #tpu.memory_space<vmem>>, vector<1x64xf32>
    %10 = vector.broadcast %9 : vector<1x64xf32> to vector<8x64xf32>
    %11 = arith.addf %8, %10 : vector<8x64xf32>
    %12 = arith.truncf %11 : vector<8x64xf32> to vector<8x64xbf16>
    %13 = tpu.iota {dimensions = array<i32: 1>} : vector<1x8xi32>
    %14 = tpu.iota {dimensions = array<i32: 0>} : vector<8x1xi32>
    %c8_i32 = arith.constant 8 : i32
    %15 = arith.muli %arg1, %c8_i32 : i32
    %16 = vector.broadcast %15 : i32 to vector<8x1xi32>
    %17 = arith.addi %14, %16 : vector<8x1xi32>
    %18 = vector.broadcast %1 : i32 to vector<1x8xi32>
    %19 = arith.cmpi sge, %13, %18 : vector<1x8xi32>
    %20 = vector.broadcast %1 : i32 to vector<8x1xi32>
    %21 = arith.cmpi sge, %17, %20 : vector<8x1xi32>
    %c0_7 = arith.constant 0 : index
    %c0_8 = arith.constant 0 : index
    %c0_9 = arith.constant 0 : index
    %22 = vector.load %arg9[%c0_7, %c0_8, %c0_9] : memref<1x8x8xf32, #tpu.memory_space<vmem>>, vector<1x8x8xf32>
    %23 = vector.shape_cast %22 : vector<1x8x8xf32> to vector<8x8xf32>
    %24 = tpu.transpose %23, [1, 0] : vector<8x8xf32> -> vector<8x8xf32>
    %cst_10 = arith.constant -0.693147182 : f32
    %25 = vector.broadcast %cst_10 : f32 to vector<8x8xf32>
    %26 = arith.mulf %24, %25 : vector<8x8xf32>
    %27 = math.exp %26 : vector<8x8xf32>
    %cst_11 = arith.constant 1.000000e+00 : f32
    %28 = vector.broadcast %cst_11 : f32 to vector<8x8xf32>
    %29 = arith.cmpf oeq, %24, %28 : vector<8x8xf32>
    %cst_12 = arith.constant 1.000000e+00 : f32
    %30 = vector.broadcast %cst_12 : f32 to vector<8x8xf32>
    %31 = arith.cmpf ogt, %24, %30 : vector<8x8xf32>
    %32 = vector.extract_strided_slice %12 {offsets = [0, 0], sizes = [8, 16], strides = [1, 1]} : vector<8x64xbf16> to vector<8x16xbf16>
    %c0_13 = arith.constant 0 : index
    %c0_14 = arith.constant 0 : index
    %33 = vector.load %arg12[%c0_13, %c0_14] : memref<8x128xbf16, #tpu.memory_space<vmem>>, vector<8x16xbf16>
    %c0_15 = arith.constant 0 : index
    %c64 = arith.constant 64 : index
    %34 = vector.load %arg12[%c0_15, %c64] : memref<8x128xbf16, #tpu.memory_space<vmem>>, vector<8x16xbf16>
    %cst_16 = arith.constant dense<0.000000e+00> : vector<8x8xf32>
    %35 = tpu.matmul %32, %33, %cst_16 {dimension_numbers = #tpu.dot_dimension_numbers<[1], [1], [0], [0], [0, 0, 1, 0], [], []>} : vector<8x16xbf16>, vector<8x16xbf16>, vector<8x8xf32> -> vector<8x8xf32>
    %cst_17 = arith.constant -1.000000e+30 : f32
    %36 = vector.shape_cast %19 : vector<1x8xi1> to vector<1x8xi1>
    %37 = vector.broadcast %36 : vector<1x8xi1> to vector<8x8xi1>
    %38 = vector.broadcast %cst_17 : f32 to vector<8x8xf32>
    %39 = arith.select %37, %38, %35 : vector<8x8xi1>, vector<8x8xf32>
    %cst_18 = arith.constant dense<0xFF800000> : vector<8xf32>
    %40 = vector.multi_reduction <maximumf>, %39, %cst_18 [1] : vector<8x8xf32> to vector<8xf32>
    %41 = vector.shape_cast %40 : vector<8xf32> to vector<8x1xf32>
    %42 = vector.broadcast %41 : vector<8x1xf32> to vector<8x8xf32>
    %43 = arith.subf %39, %42 : vector<8x8xf32>
    %44 = math.exp %43 : vector<8x8xf32>
    %cst_19 = arith.constant dense<0.000000e+00> : vector<8xf32>
    %45 = vector.multi_reduction <add>, %44, %cst_19 [1] : vector<8x8xf32> to vector<8xf32>
    %46 = vector.shape_cast %45 : vector<8xf32> to vector<8x1xf32>
    %47 = tpu.reciprocal %46 {approx = true} : vector<8x1xf32> -> vector<8x1xf32>
    %48 = vector.broadcast %47 : vector<8x1xf32> to vector<8x8xf32>
    %49 = arith.mulf %44, %48 : vector<8x8xf32>
    %cst_20 = arith.constant 0.000000e+00 : f32
    %50 = vector.shape_cast %21 : vector<8x1xi1> to vector<8x1xi1>
    %51 = vector.broadcast %50 : vector<8x1xi1> to vector<8x8xi1>
    %52 = vector.broadcast %cst_20 : f32 to vector<8x8xf32>
    %53 = arith.select %51, %52, %49 : vector<8x8xi1>, vector<8x8xf32>
    %54 = arith.mulf %53, %27 : vector<8x8xf32>
    %cst_21 = arith.constant 0.000000e+00 : f32
    %55 = vector.broadcast %cst_21 : f32 to vector<8x8xf32>
    %56 = arith.select %29, %53, %55 : vector<8x8xi1>, vector<8x8xf32>
    %57 = vector.shape_cast %56 : vector<8x8xf32> to vector<1x8x8xf32>
    %cst_22 = arith.constant dense<0.000000e+00> : vector<1xf32>
    %58 = vector.multi_reduction <add>, %57, %cst_22 [1, 2] : vector<1x8x8xf32> to vector<1xf32>
    %59 = vector.shape_cast %58 : vector<1xf32> to vector<1x1x1xf32>
    %60 = vector.extract %59[0, 0, 0] : f32 from vector<1x1x1xf32>
    %cst_23 = arith.constant 0.000000e+00 : f32
    %61 = arith.addf %cst_23, %60 : f32
    %cst_24 = arith.constant 0.000000e+00 : f32
    %62 = vector.broadcast %cst_24 : f32 to vector<8x8xf32>
    %63 = arith.select %31, %53, %62 : vector<8x8xi1>, vector<8x8xf32>
    %64 = vector.shape_cast %63 : vector<8x8xf32> to vector<1x8x8xf32>
    %cst_25 = arith.constant dense<0.000000e+00> : vector<1xf32>
    %65 = vector.multi_reduction <add>, %64, %cst_25 [1, 2] : vector<1x8x8xf32> to vector<1xf32>
    %66 = vector.shape_cast %65 : vector<1xf32> to vector<1x1x1xf32>
    %67 = vector.extract %66[0, 0, 0] : f32 from vector<1x1x1xf32>
    %cst_26 = arith.constant 0.000000e+00 : f32
    %68 = arith.addf %cst_26, %67 : f32
    %cst_27 = arith.constant 0.000000e+00 : f32
    %69 = vector.broadcast %cst_27 : f32 to vector<8x8xf32>
    %70 = arith.select %31, %54, %69 : vector<8x8xi1>, vector<8x8xf32>
    %71 = vector.shape_cast %70 : vector<8x8xf32> to vector<1x8x8xf32>
    %cst_28 = arith.constant dense<0.000000e+00> : vector<1xf32>
    %72 = vector.multi_reduction <add>, %71, %cst_28 [1, 2] : vector<1x8x8xf32> to vector<1xf32>
    %73 = vector.shape_cast %72 : vector<1xf32> to vector<1x1x1xf32>
    %74 = vector.extract %73[0, 0, 0] : f32 from vector<1x1x1xf32>
    %cst_29 = arith.constant 0.000000e+00 : f32
    %75 = arith.addf %cst_29, %74 : f32
    %76 = arith.truncf %54 : vector<8x8xf32> to vector<8x8xbf16>
    %cst_30 = arith.constant dense<0.000000e+00> : vector<8x16xf32>
    %77 = tpu.matmul %76, %34, %cst_30 {dimension_numbers = #tpu.dot_dimension_numbers<[1], [0], [0], [1], [0, 0, 1, 1], [], []>} : vector<8x8xbf16>, vector<8x16xbf16>, vector<8x16xf32> -> vector<8x16xf32>
    %78 = vector.extract_strided_slice %12 {offsets = [0, 16], sizes = [8, 16], strides = [1, 1]} : vector<8x64xbf16> to vector<8x16xbf16>
    %c0_31 = arith.constant 0 : index
    %c16 = arith.constant 16 : index
    %79 = vector.load %arg12[%c0_31, %c16] : memref<8x128xbf16, #tpu.memory_space<vmem>>, vector<8x16xbf16>
    %c0_32 = arith.constant 0 : index
    %c80 = arith.constant 80 : index
    %80 = vector.load %arg12[%c0_32, %c80] : memref<8x128xbf16, #tpu.memory_space<vmem>>, vector<8x16xbf16>
    %cst_33 = arith.constant dense<0.000000e+00> : vector<8x8xf32>
    %81 = tpu.matmul %78, %79, %cst_33 {dimension_numbers = #tpu.dot_dimension_numbers<[1], [1], [0], [0], [0, 0, 1, 0], [], []>} : vector<8x16xbf16>, vector<8x16xbf16>, vector<8x8xf32> -> vector<8x8xf32>
    %cst_34 = arith.constant -1.000000e+30 : f32
    %82 = vector.shape_cast %19 : vector<1x8xi1> to vector<1x8xi1>
    %83 = vector.broadcast %82 : vector<1x8xi1> to vector<8x8xi1>
    %84 = vector.broadcast %cst_34 : f32 to vector<8x8xf32>
    %85 = arith.select %83, %84, %81 : vector<8x8xi1>, vector<8x8xf32>
    %cst_35 = arith.constant dense<0xFF800000> : vector<8xf32>
    %86 = vector.multi_reduction <maximumf>, %85, %cst_35 [1] : vector<8x8xf32> to vector<8xf32>
    %87 = vector.shape_cast %86 : vector<8xf32> to vector<8x1xf32>
    %88 = vector.broadcast %87 : vector<8x1xf32> to vector<8x8xf32>
    %89 = arith.subf %85, %88 : vector<8x8xf32>
    %90 = math.exp %89 : vector<8x8xf32>
    %cst_36 = arith.constant dense<0.000000e+00> : vector<8xf32>
    %91 = vector.multi_reduction <add>, %90, %cst_36 [1] : vector<8x8xf32> to vector<8xf32>
    %92 = vector.shape_cast %91 : vector<8xf32> to vector<8x1xf32>
    %93 = tpu.reciprocal %92 {approx = true} : vector<8x1xf32> -> vector<8x1xf32>
    %94 = vector.broadcast %93 : vector<8x1xf32> to vector<8x8xf32>
    %95 = arith.mulf %90, %94 : vector<8x8xf32>
    %cst_37 = arith.constant 0.000000e+00 : f32
    %96 = vector.shape_cast %21 : vector<8x1xi1> to vector<8x1xi1>
    %97 = vector.broadcast %96 : vector<8x1xi1> to vector<8x8xi1>
    %98 = vector.broadcast %cst_37 : f32 to vector<8x8xf32>
    %99 = arith.select %97, %98, %95 : vector<8x8xi1>, vector<8x8xf32>
    %100 = arith.mulf %99, %27 : vector<8x8xf32>
    %cst_38 = arith.constant 0.000000e+00 : f32
    %101 = vector.broadcast %cst_38 : f32 to vector<8x8xf32>
    %102 = arith.select %29, %99, %101 : vector<8x8xi1>, vector<8x8xf32>
    %103 = vector.shape_cast %102 : vector<8x8xf32> to vector<1x8x8xf32>
    %cst_39 = arith.constant dense<0.000000e+00> : vector<1xf32>
    %104 = vector.multi_reduction <add>, %103, %cst_39 [1, 2] : vector<1x8x8xf32> to vector<1xf32>
    %105 = vector.shape_cast %104 : vector<1xf32> to vector<1x1x1xf32>
    %106 = vector.extract %105[0, 0, 0] : f32 from vector<1x1x1xf32>
    %107 = arith.addf %61, %106 : f32
    %cst_40 = arith.constant 0.000000e+00 : f32
    %108 = vector.broadcast %cst_40 : f32 to vector<8x8xf32>
    %109 = arith.select %31, %99, %108 : vector<8x8xi1>, vector<8x8xf32>
    %110 = vector.shape_cast %109 : vector<8x8xf32> to vector<1x8x8xf32>
    %cst_41 = arith.constant dense<0.000000e+00> : vector<1xf32>
    %111 = vector.multi_reduction <add>, %110, %cst_41 [1, 2] : vector<1x8x8xf32> to vector<1xf32>
    %112 = vector.shape_cast %111 : vector<1xf32> to vector<1x1x1xf32>
    %113 = vector.extract %112[0, 0, 0] : f32 from vector<1x1x1xf32>
    %114 = arith.addf %68, %113 : f32
    %cst_42 = arith.constant 0.000000e+00 : f32
    %115 = vector.broadcast %cst_42 : f32 to vector<8x8xf32>
    %116 = arith.select %31, %100, %115 : vector<8x8xi1>, vector<8x8xf32>
    %117 = vector.shape_cast %116 : vector<8x8xf32> to vector<1x8x8xf32>
    %cst_43 = arith.constant dense<0.000000e+00> : vector<1xf32>
    %118 = vector.multi_reduction <add>, %117, %cst_43 [1, 2] : vector<1x8x8xf32> to vector<1xf32>
    %119 = vector.shape_cast %118 : vector<1xf32> to vector<1x1x1xf32>
    %120 = vector.extract %119[0, 0, 0] : f32 from vector<1x1x1xf32>
    %121 = arith.addf %75, %120 : f32
    %122 = arith.truncf %100 : vector<8x8xf32> to vector<8x8xbf16>
    %cst_44 = arith.constant dense<0.000000e+00> : vector<8x16xf32>
    %123 = tpu.matmul %122, %80, %cst_44 {dimension_numbers = #tpu.dot_dimension_numbers<[1], [0], [0], [1], [0, 0, 1, 1], [], []>} : vector<8x8xbf16>, vector<8x16xbf16>, vector<8x16xf32> -> vector<8x16xf32>
    %124 = vector.extract_strided_slice %12 {offsets = [0, 32], sizes = [8, 16], strides = [1, 1]} : vector<8x64xbf16> to vector<8x16xbf16>
    %c0_45 = arith.constant 0 : index
    %c32 = arith.constant 32 : index
    %125 = vector.load %arg12[%c0_45, %c32] : memref<8x128xbf16, #tpu.memory_space<vmem>>, vector<8x16xbf16>
    %c0_46 = arith.constant 0 : index
    %c96 = arith.constant 96 : index
    %126 = vector.load %arg12[%c0_46, %c96] : memref<8x128xbf16, #tpu.memory_space<vmem>>, vector<8x16xbf16>
    %cst_47 = arith.constant dense<0.000000e+00> : vector<8x8xf32>
    %127 = tpu.matmul %124, %125, %cst_47 {dimension_numbers = #tpu.dot_dimension_numbers<[1], [1], [0], [0], [0, 0, 1, 0], [], []>} : vector<8x16xbf16>, vector<8x16xbf16>, vector<8x8xf32> -> vector<8x8xf32>
    %cst_48 = arith.constant -1.000000e+30 : f32
    %128 = vector.shape_cast %19 : vector<1x8xi1> to vector<1x8xi1>
    %129 = vector.broadcast %128 : vector<1x8xi1> to vector<8x8xi1>
    %130 = vector.broadcast %cst_48 : f32 to vector<8x8xf32>
    %131 = arith.select %129, %130, %127 : vector<8x8xi1>, vector<8x8xf32>
    %cst_49 = arith.constant dense<0xFF800000> : vector<8xf32>
    %132 = vector.multi_reduction <maximumf>, %131, %cst_49 [1] : vector<8x8xf32> to vector<8xf32>
    %133 = vector.shape_cast %132 : vector<8xf32> to vector<8x1xf32>
    %134 = vector.broadcast %133 : vector<8x1xf32> to vector<8x8xf32>
    %135 = arith.subf %131, %134 : vector<8x8xf32>
    %136 = math.exp %135 : vector<8x8xf32>
    %cst_50 = arith.constant dense<0.000000e+00> : vector<8xf32>
    %137 = vector.multi_reduction <add>, %136, %cst_50 [1] : vector<8x8xf32> to vector<8xf32>
    %138 = vector.shape_cast %137 : vector<8xf32> to vector<8x1xf32>
    %139 = tpu.reciprocal %138 {approx = true} : vector<8x1xf32> -> vector<8x1xf32>
    %140 = vector.broadcast %139 : vector<8x1xf32> to vector<8x8xf32>
    %141 = arith.mulf %136, %140 : vector<8x8xf32>
    %cst_51 = arith.constant 0.000000e+00 : f32
    %142 = vector.shape_cast %21 : vector<8x1xi1> to vector<8x1xi1>
    %143 = vector.broadcast %142 : vector<8x1xi1> to vector<8x8xi1>
    %144 = vector.broadcast %cst_51 : f32 to vector<8x8xf32>
    %145 = arith.select %143, %144, %141 : vector<8x8xi1>, vector<8x8xf32>
    %146 = arith.mulf %145, %27 : vector<8x8xf32>
    %cst_52 = arith.constant 0.000000e+00 : f32
    %147 = vector.broadcast %cst_52 : f32 to vector<8x8xf32>
    %148 = arith.select %29, %145, %147 : vector<8x8xi1>, vector<8x8xf32>
    %149 = vector.shape_cast %148 : vector<8x8xf32> to vector<1x8x8xf32>
    %cst_53 = arith.constant dense<0.000000e+00> : vector<1xf32>
    %150 = vector.multi_reduction <add>, %149, %cst_53 [1, 2] : vector<1x8x8xf32> to vector<1xf32>
    %151 = vector.shape_cast %150 : vector<1xf32> to vector<1x1x1xf32>
    %152 = vector.extract %151[0, 0, 0] : f32 from vector<1x1x1xf32>
    %153 = arith.addf %107, %152 : f32
    %cst_54 = arith.constant 0.000000e+00 : f32
    %154 = vector.broadcast %cst_54 : f32 to vector<8x8xf32>
    %155 = arith.select %31, %145, %154 : vector<8x8xi1>, vector<8x8xf32>
    %156 = vector.shape_cast %155 : vector<8x8xf32> to vector<1x8x8xf32>
    %cst_55 = arith.constant dense<0.000000e+00> : vector<1xf32>
    %157 = vector.multi_reduction <add>, %156, %cst_55 [1, 2] : vector<1x8x8xf32> to vector<1xf32>
    %158 = vector.shape_cast %157 : vector<1xf32> to vector<1x1x1xf32>
    %159 = vector.extract %158[0, 0, 0] : f32 from vector<1x1x1xf32>
    %160 = arith.addf %114, %159 : f32
    %cst_56 = arith.constant 0.000000e+00 : f32
    %161 = vector.broadcast %cst_56 : f32 to vector<8x8xf32>
    %162 = arith.select %31, %146, %161 : vector<8x8xi1>, vector<8x8xf32>
    %163 = vector.shape_cast %162 : vector<8x8xf32> to vector<1x8x8xf32>
    %cst_57 = arith.constant dense<0.000000e+00> : vector<1xf32>
    %164 = vector.multi_reduction <add>, %163, %cst_57 [1, 2] : vector<1x8x8xf32> to vector<1xf32>
    %165 = vector.shape_cast %164 : vector<1xf32> to vector<1x1x1xf32>
    %166 = vector.extract %165[0, 0, 0] : f32 from vector<1x1x1xf32>
    %167 = arith.addf %121, %166 : f32
    %168 = arith.truncf %146 : vector<8x8xf32> to vector<8x8xbf16>
    %cst_58 = arith.constant dense<0.000000e+00> : vector<8x16xf32>
    %169 = tpu.matmul %168, %126, %cst_58 {dimension_numbers = #tpu.dot_dimension_numbers<[1], [0], [0], [1], [0, 0, 1, 1], [], []>} : vector<8x8xbf16>, vector<8x16xbf16>, vector<8x16xf32> -> vector<8x16xf32>
    %170 = vector.extract_strided_slice %12 {offsets = [0, 48], sizes = [8, 16], strides = [1, 1]} : vector<8x64xbf16> to vector<8x16xbf16>
    %c0_59 = arith.constant 0 : index
    %c48 = arith.constant 48 : index
    %171 = vector.load %arg12[%c0_59, %c48] : memref<8x128xbf16, #tpu.memory_space<vmem>>, vector<8x16xbf16>
    %c0_60 = arith.constant 0 : index
    %c112 = arith.constant 112 : index
    %172 = vector.load %arg12[%c0_60, %c112] : memref<8x128xbf16, #tpu.memory_space<vmem>>, vector<8x16xbf16>
    %cst_61 = arith.constant dense<0.000000e+00> : vector<8x8xf32>
    %173 = tpu.matmul %170, %171, %cst_61 {dimension_numbers = #tpu.dot_dimension_numbers<[1], [1], [0], [0], [0, 0, 1, 0], [], []>} : vector<8x16xbf16>, vector<8x16xbf16>, vector<8x8xf32> -> vector<8x8xf32>
    %cst_62 = arith.constant -1.000000e+30 : f32
    %174 = vector.shape_cast %19 : vector<1x8xi1> to vector<1x8xi1>
    %175 = vector.broadcast %174 : vector<1x8xi1> to vector<8x8xi1>
    %176 = vector.broadcast %cst_62 : f32 to vector<8x8xf32>
    %177 = arith.select %175, %176, %173 : vector<8x8xi1>, vector<8x8xf32>
    %cst_63 = arith.constant dense<0xFF800000> : vector<8xf32>
    %178 = vector.multi_reduction <maximumf>, %177, %cst_63 [1] : vector<8x8xf32> to vector<8xf32>
    %179 = vector.shape_cast %178 : vector<8xf32> to vector<8x1xf32>
    %180 = vector.broadcast %179 : vector<8x1xf32> to vector<8x8xf32>
    %181 = arith.subf %177, %180 : vector<8x8xf32>
    %182 = math.exp %181 : vector<8x8xf32>
    %cst_64 = arith.constant dense<0.000000e+00> : vector<8xf32>
    %183 = vector.multi_reduction <add>, %182, %cst_64 [1] : vector<8x8xf32> to vector<8xf32>
    %184 = vector.shape_cast %183 : vector<8xf32> to vector<8x1xf32>
    %185 = tpu.reciprocal %184 {approx = true} : vector<8x1xf32> -> vector<8x1xf32>
    %186 = vector.broadcast %185 : vector<8x1xf32> to vector<8x8xf32>
    %187 = arith.mulf %182, %186 : vector<8x8xf32>
    %cst_65 = arith.constant 0.000000e+00 : f32
    %188 = vector.shape_cast %21 : vector<8x1xi1> to vector<8x1xi1>
    %189 = vector.broadcast %188 : vector<8x1xi1> to vector<8x8xi1>
    %190 = vector.broadcast %cst_65 : f32 to vector<8x8xf32>
    %191 = arith.select %189, %190, %187 : vector<8x8xi1>, vector<8x8xf32>
    %192 = arith.mulf %191, %27 : vector<8x8xf32>
    %cst_66 = arith.constant 0.000000e+00 : f32
    %193 = vector.broadcast %cst_66 : f32 to vector<8x8xf32>
    %194 = arith.select %29, %191, %193 : vector<8x8xi1>, vector<8x8xf32>
    %195 = vector.shape_cast %194 : vector<8x8xf32> to vector<1x8x8xf32>
    %cst_67 = arith.constant dense<0.000000e+00> : vector<1xf32>
    %196 = vector.multi_reduction <add>, %195, %cst_67 [1, 2] : vector<1x8x8xf32> to vector<1xf32>
    %197 = vector.shape_cast %196 : vector<1xf32> to vector<1x1x1xf32>
    %198 = vector.extract %197[0, 0, 0] : f32 from vector<1x1x1xf32>
    %199 = arith.addf %153, %198 : f32
    %cst_68 = arith.constant 0.000000e+00 : f32
    %200 = vector.broadcast %cst_68 : f32 to vector<8x8xf32>
    %201 = arith.select %31, %191, %200 : vector<8x8xi1>, vector<8x8xf32>
    %202 = vector.shape_cast %201 : vector<8x8xf32> to vector<1x8x8xf32>
    %cst_69 = arith.constant dense<0.000000e+00> : vector<1xf32>
    %203 = vector.multi_reduction <add>, %202, %cst_69 [1, 2] : vector<1x8x8xf32> to vector<1xf32>
    %204 = vector.shape_cast %203 : vector<1xf32> to vector<1x1x1xf32>
    %205 = vector.extract %204[0, 0, 0] : f32 from vector<1x1x1xf32>
    %206 = arith.addf %160, %205 : f32
    %cst_70 = arith.constant 0.000000e+00 : f32
    %207 = vector.broadcast %cst_70 : f32 to vector<8x8xf32>
    %208 = arith.select %31, %192, %207 : vector<8x8xi1>, vector<8x8xf32>
    %209 = vector.shape_cast %208 : vector<8x8xf32> to vector<1x8x8xf32>
    %cst_71 = arith.constant dense<0.000000e+00> : vector<1xf32>
    %210 = vector.multi_reduction <add>, %209, %cst_71 [1, 2] : vector<1x8x8xf32> to vector<1xf32>
    %211 = vector.shape_cast %210 : vector<1xf32> to vector<1x1x1xf32>
    %212 = vector.extract %211[0, 0, 0] : f32 from vector<1x1x1xf32>
    %213 = arith.addf %167, %212 : f32
    %214 = arith.truncf %192 : vector<8x8xf32> to vector<8x8xbf16>
    %cst_72 = arith.constant dense<0.000000e+00> : vector<8x16xf32>
    %215 = tpu.matmul %214, %172, %cst_72 {dimension_numbers = #tpu.dot_dimension_numbers<[1], [0], [0], [1], [0, 0, 1, 1], [], []>} : vector<8x8xbf16>, vector<8x16xbf16>, vector<8x16xf32> -> vector<8x16xf32>
    %216 = tpu.concatenate %77, %123, %169, %215 in 1 : vector<8x16xf32>, vector<8x16xf32>, vector<8x16xf32>, vector<8x16xf32> -> vector<8x64xf32>
    %c0_73 = arith.constant 0 : index
    %c0_74 = arith.constant 0 : index
    %c0_75 = arith.constant 0 : index
    %217 = vector.load %arg10[%c0_73, %c0_74, %c0_75] : memref<1x8x64xf32, #tpu.memory_space<vmem>>, vector<1x8x64xf32>
    %218 = vector.shape_cast %217 : vector<1x8x64xf32> to vector<8x64xf32>
    %219 = vector.shape_cast %216 : vector<8x64xf32> to vector<1x8x64xf32>
    tpu.vector_store %arg10[%c0_73, %c0_74, %c0_75], %219 {strides = array<i32>} : memref<1x8x64xf32, #tpu.memory_space<vmem>>, vector<1x8x64xf32>,
    %cst_76 = arith.constant 5.000000e-01 : f32
    %220 = arith.mulf %cst_76, %199 : f32
    %221 = tpu.iota {dimensions = array<i32: 0>} : vector<8x128xi32>
    %c0_i32_77 = arith.constant 0 : i32
    %222 = vector.broadcast %c0_i32_77 : i32 to vector<8x128xi32>
    %223 = arith.cmpi eq, %221, %222 : vector<8x128xi32>
    %cst_78 = arith.constant 0.000000e+00 : f32
    %224 = vector.broadcast %199 : f32 to vector<8x128xf32>
    %225 = vector.broadcast %cst_78 : f32 to vector<8x128xf32>
    %226 = arith.select %223, %224, %225 : vector<8x128xi1>, vector<8x128xf32>
    %c1_i32 = arith.constant 1 : i32
    %227 = vector.broadcast %c1_i32 : i32 to vector<8x128xi32>
    %228 = arith.cmpi eq, %221, %227 : vector<8x128xi32>
    %cst_79 = arith.constant 0.000000e+00 : f32
    %229 = vector.broadcast %206 : f32 to vector<8x128xf32>
    %230 = vector.broadcast %cst_79 : f32 to vector<8x128xf32>
    %231 = arith.select %228, %229, %230 : vector<8x128xi1>, vector<8x128xf32>
    %232 = arith.addf %226, %231 : vector<8x128xf32>
    %c2_i32 = arith.constant 2 : i32
    %233 = vector.broadcast %c2_i32 : i32 to vector<8x128xi32>
    %234 = arith.cmpi eq, %221, %233 : vector<8x128xi32>
    %cst_80 = arith.constant 0.000000e+00 : f32
    %235 = vector.broadcast %220 : f32 to vector<8x128xf32>
    %236 = vector.broadcast %cst_80 : f32 to vector<8x128xf32>
    %237 = arith.select %234, %235, %236 : vector<8x128xi1>, vector<8x128xf32>
    %238 = arith.addf %232, %237 : vector<8x128xf32>
    %c3_i32 = arith.constant 3 : i32
    %239 = vector.broadcast %c3_i32 : i32 to vector<8x128xi32>
    %240 = arith.cmpi eq, %221, %239 : vector<8x128xi32>
    %cst_81 = arith.constant 0.000000e+00 : f32
    %241 = vector.broadcast %213 : f32 to vector<8x128xf32>
    %242 = vector.broadcast %cst_81 : f32 to vector<8x128xf32>
    %243 = arith.select %240, %241, %242 : vector<8x128xi1>, vector<8x128xf32>
    %244 = arith.addf %238, %243 : vector<8x128xf32>
    %c0_82 = arith.constant 0 : index
    %c0_83 = arith.constant 0 : index
    %c0_84 = arith.constant 0 : index
    %c0_85 = arith.constant 0 : index
    %245 = vector.load %arg11[%c0_82, %c0_83, %c0_84, %c0_85] : memref<1x1x8x128xf32, #tpu.memory_space<vmem>>, vector<1x1x8x128xf32>
    %246 = vector.shape_cast %245 : vector<1x1x8x128xf32> to vector<8x128xf32>
    %247 = vector.shape_cast %244 : vector<8x128xf32> to vector<1x1x8x128xf32>
    tpu.vector_store %arg11[%c0_82, %c0_83, %c0_84, %c0_85], %247 {strides = array<i32>} : memref<1x1x8x128xf32, #tpu.memory_space<vmem>>, vector<1x1x8x128xf32>,
    return
  }
  func.func @transform_0(%arg0: i32, %arg1: i32, %arg2: memref<2xi32, #tpu.memory_space<smem>>) -> (i32, i32, i32) {
    %c0_i32 = arith.constant 0 : i32
    %c0_i32_0 = arith.constant 0 : i32
    return %arg0, %arg1, %c0_i32 : i32, i32, i32
  }
  func.func @transform_1(%arg0: i32, %arg1: i32, %arg2: memref<2xi32, #tpu.memory_space<smem>>) -> (i32, i32, i32) {
    %c0_i32 = arith.constant 0 : i32
    %c0_i32_0 = arith.constant 0 : i32
    %c0_i32_1 = arith.constant 0 : i32
    return %arg0, %c0_i32, %c0_i32_0 : i32, i32, i32
  }
  func.func @transform_2(%arg0: i32, %arg1: i32, %arg2: memref<2xi32, #tpu.memory_space<smem>>) -> (i32, i32) {
    %c0_i32 = arith.constant 0 : i32
    %c0_i32_0 = arith.constant 0 : i32
    %c0_i32_1 = arith.constant 0 : i32
    return %c0_i32, %c0_i32_0 : i32, i32
  }
  func.func @transform_3(%arg0: i32, %arg1: i32, %arg2: memref<2xi32, #tpu.memory_space<smem>>) -> (i32, i32) {
    %c0_i32 = arith.constant 0 : i32
    %c0_i32_0 = arith.constant 0 : i32
    %c0_i32_1 = arith.constant 0 : i32
    return %c0_i32, %c0_i32_0 : i32, i32
  }
  func.func @transform_4(%arg0: i32, %arg1: i32, %arg2: memref<2xi32, #tpu.memory_space<smem>>) -> (i32, i32) {
    %c0_i32 = arith.constant 0 : i32
    %c0_i32_0 = arith.constant 0 : i32
    %c0_i32_1 = arith.constant 0 : i32
    return %c0_i32, %c0_i32_0 : i32, i32
  }
  func.func @transform_5(%arg0: i32, %arg1: i32, %arg2: memref<2xi32, #tpu.memory_space<smem>>) -> (i32, i32) {
    %c0_i32 = arith.constant 0 : i32
    %c0_i32_0 = arith.constant 0 : i32
    %c0_i32_1 = arith.constant 0 : i32
    return %c0_i32, %c0_i32_0 : i32, i32
  }
  func.func @transform_6(%arg0: i32, %arg1: i32, %arg2: memref<2xi32, #tpu.memory_space<smem>>) -> (i32, i32, i32) {
    %c0_i32 = arith.constant 0 : i32
    %c0_i32_0 = arith.constant 0 : i32
    return %arg0, %c0_i32, %arg1 : i32, i32, i32
  }
  func.func @transform_7(%arg0: i32, %arg1: i32, %arg2: memref<2xi32, #tpu.memory_space<smem>>) -> (i32, i32, i32) {
    %c0_i32 = arith.constant 0 : i32
    %c0_i32_0 = arith.constant 0 : i32
    return %arg0, %arg1, %c0_i32 : i32, i32, i32
  }
  func.func @transform_8(%arg0: i32, %arg1: i32, %arg2: memref<2xi32, #tpu.memory_space<smem>>) -> (i32, i32, i32, i32) {
    %c0_i32 = arith.constant 0 : i32
    %c0_i32_0 = arith.constant 0 : i32
    %c0_i32_1 = arith.constant 0 : i32
    return %arg0, %arg1, %c0_i32, %c0_i32_0 : i32, i32, i32, i32
  }
}

</mosaic_0001>

<bundles_post_ra>
// kernel: tpu_custom_call.1
= control target key start
LH: loop header
LB: loop body
LE: loop exit
PB: predicated region body
PF: predicated region fallthrough
CT: control target
= control target key end

     0   :  { %s2469_s0 = inlined_call_operand.hbm [shape: s32[2], index: 0, kind: input, shape index: {}]   ;;  %s2470_s1 = inlined_call_operand.hbm [shape: bf16[2,8,16], index: 1, kind: input, shape index: {}]   ;;  %s2471_s2 = inlined_call_operand.hbm [shape: bf16[2,8,16], index: 2, kind: input, shape index: {}]   ;;  %s2472_s3 = inlined_call_operand.vmem [shape: bf16[16,64], index: 3, kind: input, shape index: {}]   ;;  %s2473_s4 = inlined_call_operand.vmem [shape: f32[1,64], index: 4, kind: input, shape index: {}]   ;;  %s2474_s5 = inlined_call_operand.hbm [shape: bf16[16,128], index: 5, kind: input, shape index: {}]   ;;  %s2475_s6 = inlined_call_operand.vmem [shape: f32[1,128], index: 6, kind: input, shape index: {}]   ;;  %s2476_s7 = inlined_call_operand.vmem [shape: f32[2,8,8], index: 7, kind: input, shape index: {}]   ;;  %s2477_s8 = inlined_call_operand.hbm [shape: f32[2,8,64], index: 8, kind: output, shape index: {0}]   ;;  %s2478_s9 = inlined_call_operand.hbm [shape: f32[2,1,8,128], index: 9, kind: output, shape index: {1}]  }
   0x1   :  { %2489 = sst [smem:[#allocation26_spill]] %s2470_s1  ;;  %s1702_s11 = scalar_lea.hbm %s2469_s0, 16 }
   0x2   :  { %2490 = sst [smem:[#allocation27_spill]] %s2471_s2  ;;  %p1703_p0 = scmp.ne.s32.totalorder %s2469_s0, %s1702_s11 }
   0x3   :  { %2491 = sst [smem:[#allocation28_spill]] %s2474_s5  ;;  %p1706_p1 = scmp.lt.u32.totalorder %s1702_s11, %s2469_s0 }
   0x5   :  { %p1708_p2 = pnand %p1706_p1, %p1703_p0 }
   0x7   :  { %1711 = shalt.err (!%p1708_p2)  }
   0x8   :  { %s1926_s16 = smov [#allocation4]  }
   0x9   :  { %16 = dma.hbm_to_smem %s2469_s0, 16, %s1926_s16, [#allocation3] }
   0xa   :  { %1880 = dma.done.wait [#allocation3], 16 }
   0xb   :  { %1881 = vsyncadd [#allocation3], 4294967280 }
   0xc   :  { %18 = sfence }
   0xd   :  { %19 = vsyncpa [#allocation6], 0 }
   0xe   :  { %21 = vsyncpa [#allocation6 + $0x1], 0 }
   0xf   :  { %22 = vsyncpa [#allocation9], 0 }
  0x10   :  { %24 = vsyncpa [#allocation9 + $0x1], 0 }
  0x11   :  { %25 = vsyncpa [#allocation7], 0 }
  0x12   :  { %27 = vsyncpa [#allocation7 + $0x1], 0 }
  0x13   :  { %28 = vsyncpa [#allocation13], 0 }
  0x14   :  { %30 = vsyncpa [#allocation13 + $0x1], 0  ;;  %s2005_s19 = smov 0   ;;  %s2007_s20 = smov 0  }
  0x15   :  { %s2009_s21 = smov 0   ;;  %s2011_s22 = smov 0  }
  0x16   :  { %s2013_s0 = smov 0   ;;  %s2015_s23 = smov 0  }
  0x17 LB: > { %2492 = sst [smem:[#allocation20_spill]] %s1904_s19  ;;  %s2036_s24 = sadd.s32 4294967295, %s1924_s23   ;;  %s1924_s23 = sphi %s2015_s23, %s36_s23   ;;  %s1920_s0 = sphi %s2013_s0, %s2526_s0   ;;  %s1916_s22 = sphi %s2011_s22, %s2525_s22   ;;  %s1912_s21 = sphi %s2009_s21, %s2524_s21   ;;  %s1908_s20 = sphi %s2007_s20, %s2528_s20   ;;  %s1904_s19 = sphi %s2005_s19, %s2527_s19  }
  0x18   : > { %2493 = sst [smem:[#allocation21_spill]] %s1912_s21  ;;  %s1446_s25 = sadd.s32 4294967294, %s1924_s23  }
  0x19   : > { %2494 = sst [smem:[#allocation22_spill]] %s1920_s0  ;;  %p70_p3 = scmp.ne.s32.totalorder %s1908_s20, %s1904_s19 }
  0x1a   : > { %p2479_p4 = scmp.eq.s32.totalorder %s2036_s24, 0  ;;  %p240_p6 = scmp.eq.s32.totalorder %s1446_s25, 1 }
  0x1b   : > { %p1447_p8 = scmp.ge.s32.totalorder %s1924_s23, 1  ;;  %p275_p10 = scmp.lt.s32.totalorder %s1924_s23, 3 }
  0x1c   : > { %p2045_p7 = por %p2479_p4, %p70_p3  ;;  %p2050_p9 = por %p240_p6, %p70_p3 }
  0x1d   : > { %p2055_p11 = pnand %p1447_p8, %p275_p10  ;;  %s1927_s29 = smov [#allocation10]  }
  0x1e   : > { %s2495_s26 = scalar_select %p2045_p7, 1, 0 }
  0x1f   : > { %s2496_s27 = scalar_select %p2050_p9, 1, 0 }
  0x20   : > { %s2498_s28 = scalar_select %p2055_p11, 1, 0 }
  0x21   : > { %2497 = sst [smem:[#allocation23_spill]] %s2496_s27  ;;  %s293_s30 = sshll.u32 %s1927_s29, 4  ;;  %s294_s30 = int_to_ptr.vmem [resolvable:$true] %s293_s30 }
  0x22   : > { %p1598_p12 = pneg %p2055_p11  ;;  %s48_s11 = sadd.s32 1, %s1920_s0 }
  0x23   : > { %s2500_s5 = sld [smem:[#allocation28_spill]] }
  0x24   : > { %p2064_p0 = pnand %p1598_p12, %p2479_p4 }
  0x26   : > { %p1714_p2 = pneg %p2064_p0 }
  0x29   : > { %s1712_s14 = scalar_lea.hbm %s2500_s5, 128 }
  0x2a   : > { %p1713_p1 = scmp.ne.s32.totalorder %s2500_s5, %s1712_s14  ;;  %p1719_p8 = scmp.lt.u32.totalorder %s1712_s14, %s2500_s5 }
  0x2c   : > { %p1715_p3 = pnand %p1714_p2, %p1713_p1 }
  0x2e   : > { %p1716_p6 = pneg %p1715_p3 }
  0x30   : > { %p1721_p10 = pnand %p1719_p8, %p1716_p6 }
  0x32   : > { %1724 = shalt.err (!%p1721_p10)
}
  0x33   : > { %s1725_s25 = scalar_lea.vmem %s294_s30, 128  ;;  %p1733_p5 = scmp.lt.s32.totalorder %s294_s30, %s294_s30 }
  0x34   : > { %p1726_p12 = scmp.ne.s32.totalorder %s294_s30, %s1725_s25  ;;  %p1734_p9 = scmp.lt.s32.totalorder %s1725_s25, %s1725_s25 }
  0x36   : > { %p1728_p13 = pnand %p1726_p12, %p1714_p2  ;;  %p1735_p7 = por %p1734_p9, %p1733_p5 }
  0x38   : > { %p1729_p4 = pneg %p1728_p13 }
  0x3a   : > { %p1736_p11 = pnand %p1735_p7, %p1729_p4 }
  0x3c   : > { %1739 = shalt.err (!%p1736_p11)
}
  0x3d   : > { %s1928_s29 = smov 64   ;;  %s1929_s12 = smov 4  }
  0x3e   : > { %1601 = dma.hbm_to_vmem [thread:$0]  (!%p2064_p0), %s2500_s5, 128, %s294_s30, [#allocation9], %s1928_s29, %s1928_s29, %s1929_s12  }
  0x3f   : > { %p50_p4 = scmp.ge.s32.totalorder %s48_s11, 2  ;;  %s57_s15 = sadd.s32 1, %s1912_s21 }
  0x40   : > { %p64_p5 = scmp.ne.s32.totalorder %s1912_s21, %s1908_s20  ;;  %p65_p7 = scmp.eq.s32.totalorder %s1924_s23, 0 }
  0x41   : > { %s2530_s11 = smov (%p50_p4, %s48_s11), 0  ;;  %p2503_p11 = scmp.eq.s32.totalorder %s2036_s24, 1 }
  0x42   : > { %2501 = sst [smem:[#allocation24_spill]] %s2530_s11  ;;  %p2091_p9 = por %p65_p7, %p64_p5 }
  0x43   : > { %p2097_p13 = por %p2503_p11, %p64_p5  ;;  %s52_s17 = ssub.s32 %s1920_s0, %s2530_s11 }
  0x44   : > { %p1617_p0 = scmp.lt.s32.totalorder %s1924_s23, 2  ;;  %p55_p1 = scmp.eq.s32.totalorder %s52_s17, 0 }
  0x45   : > { %s2504_s10 = scalar_select %p2097_p13, 1, 0 }
  0x46   : > { %s310_s30 = sand.u32 1, %s1912_s21   ;;  %s1451_s29 = sshll.u32 %s1920_s0, 6 }
  0x47   : > { %s2105_s18 = sshll.u32 %s310_s30, 2  ;;  %s2506_s1 = sld [smem:[#allocation26_spill]] }
  0x48   : > { %s2108_s25 = scalar_select %p55_p1, %s1912_s21, %s57_s15  }
  0x49   : > { %s314_s5 = scalar_lea.vmem [#allocation5], %s2105_s18  ;;  %p2121_p2 = pnand %p1617_p0, %p2091_p9 }
  0x4a   : > { %2505 = sst [smem:[#allocation25_spill]] %s2108_s25  ;;  %s322_s11 = sshll.u32 %s314_s5, 4  ;;  %s2117_s11 = int_to_ptr.vmem [resolvable:$true] %s322_s11 }
  0x4b   : > { %s2508_s2 = sld [smem:[#allocation27_spill]]  ;;  %s329_s13 = sand.u32 1, %s1924_s23  }
  0x4c   : > { %s311_s25 = scalar_lea.sflag [#allocation6], %s310_s30  ;;  %p1742_p6 = pneg %p2121_p2 }
  0x4d   : > { %s2114_s14 = scalar_lea.hbm %s2506_s1, %s1451_s29  ;;  %s1745_s27 = scalar_lea.hbm %s2506_s1, 128 }
  0x4e   : > { %s1740_s21 = scalar_lea.hbm %s2114_s14, 64  ;;  %p1746_p12 = scmp.lt.u32.totalorder %s2114_s14, %s2506_s1 }
  0x4f   : > { %p1741_p3 = scmp.ne.s32.totalorder %s2114_s14, %s1740_s21  ;;  %p1747_p4 = scmp.lt.u32.totalorder %s1745_s27, %s1740_s21 }
  0x50   : > { %p1749_p7 = scmp.lt.u32.totalorder %s1740_s21, %s2114_s14 }
  0x51   : > { %s2128_s12 = scalar_lea.hbm %s2508_s2, %s1451_s29  ;;  %p1743_p8 = pnand %p1742_p6, %p1741_p3 }
  0x52   : > { %p1748_p5 = por %p1747_p4, %p1746_p12 }
  0x53   : > { %p1744_p10 = pneg %p1743_p8 }
  0x54   : > { %p1750_p9 = por %p1749_p7, %p1748_p5 }
  0x56   : > { %p1751_p11 = pnand %p1750_p9, %p1744_p10 }
  0x58   : > { %1754 = shalt.err (!%p1751_p11)
}
  0x59   : > { %s1755_s30 = scalar_lea.vmem %s2117_s11, 64  ;;  %s1930_s29 = smov [#allocation5]  }
  0x5a   : > { %p1756_p0 = scmp.ne.s32.totalorder %s2117_s11, %s1755_s30  ;;  %s1760_s15 = sshll.u32 %s1930_s29, 4  ;;  %s1761_s15 = int_to_ptr.vmem [resolvable:$false] %s1760_s15 }
  0x5b   : > { %s1762_s19 = scalar_lea.vmem %s1761_s15, 128  ;;  %p1763_p8 = scmp.lt.s32.totalorder %s2117_s11, %s1761_s15 }
  0x5c   : > { %p1758_p1 = pnand %p1756_p0, %p1742_p6  ;;  %p1764_p12 = scmp.lt.s32.totalorder %s1762_s19, %s1755_s30 }
  0x5e   : > { %p1759_p3 = pneg %p1758_p1  ;;  %p1765_p4 = por %p1764_p12, %p1763_p8 }
  0x60   : > { %p1766_p5 = pnand %p1765_p4, %p1759_p3 }
  0x62   : > { %1769 = shalt.err (!%p1766_p5)
}
  0x63   : > { %1605 = dma.hbm_to_vmem [thread:$0]  (!%p2121_p2), %s2114_s14, 64, %s2117_s11, %s311_s25  }
  0x64   : > { %s333_s21 = scalar_lea.vmem [#allocation8], %s2105_s18  ;;  %s330_s5 = scalar_lea.sflag [#allocation9], %s329_s13 }
  0x65   : > { %s340_s27 = sshll.u32 %s333_s21, 4  ;;  %s1770_s16 = scalar_lea.hbm %s2128_s12, 64  ;;  %s341_s27 = int_to_ptr.vmem [resolvable:$true] %s340_s27 }
  0x66   : > { %p1771_p10 = scmp.ne.s32.totalorder %s2128_s12, %s1770_s16  ;;  %s1775_s29 = scalar_lea.hbm %s2508_s2, 128 }
  0x67   : > { %p1776_p11 = scmp.lt.u32.totalorder %s2128_s12, %s2508_s2  ;;  %p1777_p0 = scmp.lt.u32.totalorder %s1775_s29, %s1770_s16 }
  0x68   : > { %p1773_p7 = pnand %p1771_p10, %p1742_p6  ;;  %p1779_p3 = scmp.lt.u32.totalorder %s1770_s16, %s2128_s12 }
  0x69   : > { %p1778_p1 = por %p1777_p0, %p1776_p11 }
  0x6a   : > { %p1774_p9 = pneg %p1773_p7 }
  0x6b   : > { %p1780_p8 = por %p1779_p3, %p1778_p1 }
  0x6d   : > { %p1781_p12 = pnand %p1780_p8, %p1774_p9 }
  0x6f   : > { %1784 = shalt.err (!%p1781_p12)
}
  0x70   : > { %s1785_s11 = scalar_lea.vmem %s341_s27, 64  ;;  %s1931_s18 = smov [#allocation8]  }
  0x71   : > { %p1786_p4 = scmp.ne.s32.totalorder %s341_s27, %s1785_s11  ;;  %s1790_s25 = sshll.u32 %s1931_s18, 4  ;;  %s1791_s25 = int_to_ptr.vmem [resolvable:$false] %s1790_s25 }
  0x72   : > { %s1792_s14 = scalar_lea.vmem %s1791_s25, 128  ;;  %p1793_p7 = scmp.lt.s32.totalorder %s341_s27, %s1791_s25 }
  0x73   : > { %p1788_p5 = pnand %p1786_p4, %p1742_p6  ;;  %p1794_p13 = scmp.lt.s32.totalorder %s1792_s14, %s1785_s11 }
  0x75   : > { %p1789_p10 = pneg %p1788_p5  ;;  %p1795_p0 = por %p1794_p13, %p1793_p7 }
  0x77   : > { %p1796_p11 = pnand %p1795_p0, %p1789_p10 }
  0x79   : > { %1799 = shalt.err (!%p1796_p11)
}
  0x7a   : > { %1608 = dma.hbm_to_vmem [thread:$0]  (!%p2121_p2), %s2128_s12, 64, %s341_s27, %s330_s5  }
  0x7b   : > { %p2509_p9 = scmp.ne.s32.totalorder %s2498_s28, 0 }
  0x7c   : > { %s2181_s13 = sand.u32 (!%p2509_p9), 1, %s1908_s20   ;;  %p2510_p6 = scmp.ne.s32.totalorder (!%p2509_p9), %s2495_s26, 0 }
  0x7d   : > { %359 = sbr.rel (%p2509_p9) target bundleno = 1441 (0x5a1), region = 48  ;;  %s1455_s21 = sshll.u32 (!%p2509_p9), %s2181_s13, 2 }
  0x7e   : > { %s362_s16 = scalar_lea.sflag (!%p2509_p9), [#allocation6], %s2181_s13  ;;  %s365_s0 = scalar_lea.vmem (!%p2509_p9), [#allocation5], %s1455_s21 }
  0x84   : > { %1883 = dma.done.wait (%p2510_p6), %s362_s16, 64  }
  0x85   : > { %1885 = vsyncadd (%p2510_p6), %s362_s16, 4294967232  ;;  %s370_s17 = sand.u32 1, %s2036_s24   ;;  %s374_s28 = scalar_lea.vmem [#allocation8], %s1455_s21 }
  0x86   : > { %s371_s12 = scalar_lea.sflag [#allocation9], %s370_s17 }
  0x87   : > { %1887 = dma.done.wait (%p2510_p6), %s371_s12, 64  }
  0x88   : > { %1889 = vsyncadd (%p2510_p6), %s371_s12, 4294967232  ;;  %p2511_p13 = scmp.eq.s32.totalorder %s2036_s24, 0 }
  0x8a   : > { %1891 = dma.done.wait (%p2511_p13), [#allocation9], 128   ;;  %p2512_p2 = pmov %p2511_p13 }
  0x8b   : > { %v1932_v0 = vmov 0.0   ;;  %vm1933_vm0 = vmmov 0   ;;  %v1681_v1 = vld [vmem:[#allocation10] sm:$0xff]   ;;  %v441_v2 = vld [vmem:[%s374_s28] sm:$0xf]  ;;  %vm457_vm1 = vcmask 130048   ;;  %v564_v31 = vlaneseq }
  0x8c   : > { %1893 = vsyncadd (%p2512_p2), [#allocation9], 4294967168  ;;  %1502 = vmatprep.subr.bf16.mxu0 %v1932_v0  ;;  %1504 = vmatprep.mubr.msk.bf16.mxu0 %vm1933_vm0, %v1932_v0  ;;  %v1682_v3 = vld [vmem:[%s2472_s3] sm:$0xff]   ;;  %s1934_s15 = smov 96   ;;  %s1935_s19 = smov 112   ;;  %vm662_vm3 = vcmask 64512  }
  0x8d   : > { %1508 = vmatprep.subr.bf16.mxu1 %v1932_v0  ;;  %1510 = vmatprep.mubr.msk.bf16.mxu1 %vm1933_vm0, %v1932_v0  ;;  %v503_v4 = vld [vmem:[%s365_s0] sm:$0xf]  ;;  %s1936_s11 = smov 80   ;;  %s2244_s18 = sld [smem:[#allocation4 + %s1916_s22]]  ;;  %v565_v32 = vand.u32 127, %v564_v31  ;;  %vm723_vm4 = vcmask 1043456  }
  0x8e   : > { %1503 = vmatpush3.bf16.msra.mxu0 %v1681_v1  ;;  %1509 = vmatpush3.bf16.msra.mxu1 %v1682_v3  ;;  %v1461_v5 = vld [vmem:[%s2475_s6] ss:$0 sm:$0xff]  ;;  %s1937_s25 = smov 64   ;;  %s2488_s14 = smov 48  }
  0x8f   : > { %1514 = vmatprep.subr.bf16.mxu0 %v1932_v0  ;;  %1520 = vmatprep.subr.bf16.mxu1 %v1932_v0  ;;  %v1464_v16 = vld [vmem:[%s2473_s4] ss:$0 sm:$0xff]  ;;  %s1939_s21 = smov 32   ;;  %s1940_s16 = smov 16  }
  0x90   : > { %p428_p1 = scmp.lt.s32.totalorder %s1916_s22, 1  ;;  %p2518_p8 = scmp.ne.s32.totalorder %s2504_s10, 0 }
  0x91   : > { %1505 = vmatmul.mubr.msk.bf16.vlgmr.msra.gmra.mrb[0].mxu0 %vm457_vm1, %v441_v2  ;;  %1511 = vmatmul.mubr.msk.bf16.vlgmr.msra.gmra.mrb[0].mxu1 %vm457_vm1, %v503_v4 }
  0x92   : > { %1516 = vmatprep.mubr.msk.bf16.mxu0 %vm1933_vm0, %v1932_v0  ;;  %1522 = vmatprep.mubr.msk.bf16.mxu1 %vm1933_vm0, %v1932_v0  ;;  %s429_s0 = scalar_select %p428_p1, %s1916_s22, 1 }
  0x93   : > { %v571_v33 = vstv %s2244_s18 }
  0x94   : > { %vm2250_vm2 = vcmp.ge.s32.totalorder %v565_v32, %v571_v33  ;;  %s1460_s17 = sshll.u32 %s429_s0, 3 }
  0x95   : > { %s434_s26 = scalar_lea.vmem %s2476_s7, %s1460_s17 }
 0x164   : > { %v495_v6 = vpop.f32.mrb[0].mxu0  ;;  %v557_v10 = vpop.f32.mrb[0].mxu1 }
 0x165   : > { %v496_v7 = vadd.f32 %v1461_v5, %v495_v6  ;;  %v1506_v8 = vpop.f32.mrb[1].mxu0  ;;  %v1512_v13 = vpop.f32.mrb[1].mxu1  ;;  %v558_v17 = vadd.f32 %v1464_v16, %v557_v10 }
 0x166   : > { %v498_v9 = vpop.f32.mrb[2].mxu0  ;;  %v560_v14 = vpop.f32.mrb[2].mxu1 }
 0x167   : > { %v501_v11 = vpack.c.bf16 %v496_v7, %v496_v7  ;;  %v1507_v12 = vpop.f32.mrb[3].mxu0  ;;  %v1513_v15 = vpop.f32.mrb[3].mxu1  ;;  %v563_v21 = vpack.c.bf16 %v558_v17, %v558_v17 }
 0x169   : > { %502 = vst [vmem:[#allocation2] sm:$0xf] %v501_v11 }
 0x170   : > { %v612_v18 = vld [vmem:[#allocation2] sm:$0xf] }
 0x171   : > { %v617_v19 = vsel %vm457_vm1, %v612_v18, 0  ;;  %v2222_v20 = vcombine.low %v612_v18, %v612_v18  ;;  %v574_v18 = vld [vmem:[%s434_s26] sm:$0xff] }
 0x172   : > { %1515 = vmatpush3.bf16.xpose.msra.mxu0 %v617_v19 }
 0x173   : > { %919 = vrot.lane.b32.xlu1 %v2222_v20, %s1934_s15  ;;  %770 = vrot.lane.b32.xlu0 %v2222_v20, %s1935_s19 }
 0x174   : > { %1526 = vmatprep.subr.bf16.mxu0 %v1932_v0 }
 0x177   : > { %768 = vrot.lane.b32.xlu0 %v563_v21, %s1935_s19  ;;  %917 = vrot.lane.b32.xlu1 %v563_v21, %s1934_s15 }
 0x179   : > { %1517 = vmatmul.mubr.msk.bf16.vlgmr.msra.gmra.mrb[4].mxu0 %vm457_vm1, %v563_v21 }
 0x17a   : > { %1528 = vmatprep.mubr.msk.bf16.mxu0 %vm1933_vm0, %v1932_v0 }
 0x17b   : > { %1068 = vrot.lane.b32.xlu0 %v2222_v20, %s1936_s11  ;;  %1066 = vrot.lane.b32.xlu1 %v563_v21, %s1936_s11 }
 0x1e5   : > { %v771_v22 = vpop.permute.xlu0 %770  ;;  %v920_v24 = vpop.permute.xlu1 %919 }
 0x1e6   : > { %v776_v23 = vsel %vm457_vm1, %v771_v22, 0  ;;  %v925_v26 = vsel %vm457_vm1, %v920_v24, 0  ;;  %v2288_v24 = vshrl.u32 %v564_v31, 7 }
 0x1e7   : > { %1527 = vmatpush3.bf16.xpose.msra.mxu0 %v776_v23 }
 0x1e8   : > { %1538 = vmatprep.subr.bf16.mxu0 %v1932_v0  ;;  %vm2293_vm5 = vcmp.ge.s32.totalorder %v2288_v24, %v571_v33  ;;  %vm1235_vm8 = vcmp.eq.s32.totalorder %v2288_v24, 0  ;;  %vm1238_vm9 = vcmp.eq.s32.totalorder %v2288_v24, 1  ;;  %vm1242_vm10 = vcmp.eq.s32.totalorder %v2288_v24, 2 }
 0x1e9   : > { %v769_v25 = vpop.permute.xlu0 %768  ;;  %v918_v28 = vpop.permute.xlu1 %917  ;;  %vm1246_vm11 = vcmp.eq.s32.totalorder %v2288_v24, 3 }
 0x1ed   : > { %v1069_v27 = vpop.permute.xlu0 %1068  ;;  %v1067_v30 = vpop.permute.xlu1 %1066 }
 0x1ee   : > { %1529 = vmatmul.mubr.msk.bf16.vlgmr.msra.gmra.mrb[8].mxu0 %vm457_vm1, %v769_v25  ;;  %v1074_v29 = vsel %vm457_vm1, %v1069_v27, 0 }
 0x1ef   : > { %1539 = vmatpush3.bf16.xpose.msra.mxu0 %v925_v26  ;;  %1540 = vmatprep.mubr.msk.bf16.mxu0 %vm1933_vm0, %v1932_v0 }
 0x1f0   : > { %1550 = vmatprep.subr.bf16.mxu0 %v1932_v0 }
 0x1f6   : > { %1541 = vmatmul.mubr.msk.bf16.vlgmr.msra.gmra.mrb[12].mxu0 %vm457_vm1, %v918_v28 }
 0x1f7   : > { %1551 = vmatpush3.bf16.xpose.msra.mxu0 %v1074_v29  ;;  %1552 = vmatprep.mubr.msk.bf16.mxu0 %vm1933_vm0, %v1932_v0 }
 0x1fe   : > { %1553 = vmatmul.mubr.msk.bf16.vlgmr.msra.gmra.mrb[16].mxu0 %vm457_vm1, %v1067_v30 }
 0x24c   : > { %v653_v35 = vpop.f32.mrb[4].mxu0 }
 0x24d   : > { %v661_v36 = vsel %vm2250_vm2, -1e+30, %v653_v35  ;;  %v1518_v37 = vpop.f32.mrb[5].mxu0 }
 0x24e   : > { %v656_v38 = vpop.f32.mrb[6].mxu0  ;;  %v663_v39 = vsel %vm662_vm3, %v661_v36, -inf }
 0x24f   : > { %v1519_v40 = vpop.f32.mrb[7].mxu0  ;;  %664 = vmax.xlane.f32.xlu0 %v663_v39 }
 0x2c1   : > { %v812_v41 = vpop.f32.mrb[8].mxu0 }
 0x2c2   : > { %v818_v42 = vsel %vm2250_vm2, -1e+30, %v812_v41  ;;  %v1530_v43 = vpop.f32.mrb[9].mxu0 }
 0x2c3   : > { %v815_v44 = vpop.f32.mrb[10].mxu0  ;;  %v819_v45 = vsel %vm662_vm3, %v818_v42, -inf }
 0x2c4   : > { %v1531_v46 = vpop.f32.mrb[11].mxu0  ;;  %820 = vmax.xlane.f32.xlu1 %v819_v45 }
 0x2c9   : > { %v961_v47 = vpop.f32.mrb[12].mxu0 }
 0x2ca   : > { %v967_v48 = vsel %vm2250_vm2, -1e+30, %v961_v47  ;;  %v1542_v49 = vpop.f32.mrb[13].mxu0 }
 0x2cb   : > { %v964_v50 = vpop.f32.mrb[14].mxu0  ;;  %v968_v51 = vsel %vm662_vm3, %v967_v48, -inf }
 0x2cc   : > { %v1543_v52 = vpop.f32.mrb[15].mxu0  ;;  %969 = vmax.xlane.f32.xlu0 %v968_v51 }
 0x2d1   : > { %v1110_v53 = vpop.f32.mrb[16].mxu0 }
 0x2d2   : > { %v1116_v54 = vsel %vm2250_vm2, -1e+30, %v1110_v53  ;;  %v1554_v55 = vpop.f32.mrb[17].mxu0 }
 0x2d3   : > { %v1113_v56 = vpop.f32.mrb[18].mxu0  ;;  %v1117_v57 = vsel %vm662_vm3, %v1116_v54, -inf }
 0x2d4   : > { %v1555_v58 = vpop.f32.mrb[19].mxu0  ;;  %1118 = vmax.xlane.f32.xlu0 %v1117_v57 }
 0x2d5   : > { %718 = vrot.lane.b32.xlu1 %v2222_v20, %s1937_s25 }
 0x2dc   : > { %v665_v59 = vpop.xlane.xlu0 %664 }
 0x2dd   : > { %v666_v60 = vsub.f32 %v661_v36, %v665_v59 }
 0x2df   : > { %v667_v61 = vmul.f32 1.442695, %v666_v60 }
 0x2e1   : > { %1684 = vpow2.f32 %v667_v61 }
 0x2eb   : > { %v1685_v62 = vpop.eup %1684 }
 0x2ec   : > { %v669_v63 = vsel %vm662_vm3, %v1685_v62, 0.0 }
 0x2f9   : > { %670 = vadd.xlane.f32.xlu1 %v669_v63 }
 0x351   : > { %v821_v1 = vpop.xlane.xlu1 %820 }
 0x352   : > { %v822_v2 = vsub.f32 %v818_v42, %v821_v1 }
 0x354   : > { %v823_v3 = vmul.f32 1.442695, %v822_v2 }
 0x355   : > { %v719_v4 = vpop.permute.xlu1 %718 }
 0x356   : > { %1686 = vpow2.f32 %v823_v3  ;;  %v725_v5 = vsel %vm723_vm4, %v719_v4, 0 }
 0x357   : > { %1521 = vmatpush3.bf16.msra.mxu1 %v725_v5 }
 0x358   : > { %1532 = vmatprep.subr.bf16.mxu1 %v1932_v0 }
 0x359   : > { %v970_v6 = vpop.xlane.xlu0 %969 }
 0x35a   : > { %v971_v7 = vsub.f32 %v967_v48, %v970_v6 }
 0x35c   : > { %v972_v8 = vmul.f32 1.442695, %v971_v7 }
 0x35e   : > { %1688 = vpow2.f32 %v972_v8 }
 0x360   : > { %v1687_v9 = vpop.eup %1686 }
 0x361   : > { %v1119_v10 = vpop.xlane.xlu0 %1118  ;;  %v825_v11 = vsel %vm662_vm3, %v1687_v9, 0.0 }
 0x362   : > { %v1120_v12 = vsub.f32 %v1116_v54, %v1119_v10  ;;  %826 = vadd.xlane.f32.xlu0 %v825_v11 }
 0x364   : > { %v1121_v13 = vmul.f32 1.442695, %v1120_v12 }
 0x366   : > { %1690 = vpow2.f32 %v1121_v13 }
 0x368   : > { %v2271_v14 = vpop.eup %1688 }
 0x369   : > { %v974_v15 = vsel %vm662_vm3, %v2271_v14, 0.0 }
 0x36a   : > { %975 = vadd.xlane.f32.xlu1 %v974_v15 }
 0x370   : > { %v1691_v16 = vpop.eup %1690 }
 0x371   : > { %v1123_v17 = vsel %vm662_vm3, %v1691_v16, 0.0 }
 0x372   : > { %1124 = vadd.xlane.f32.xlu0 %v1123_v17 }
 0x37b   : > { %869 = vrot.lane.b32.xlu1 %v2222_v20, %s2488_s14 }
 0x37f   : > { %1018 = vrot.lane.b32.xlu1 %v2222_v20, %s1939_s21 }
 0x383   : > { %1167 = vrot.lane.b32.xlu1 %v2222_v20, %s1940_s16 }
 0x386   : > { %v671_v21 = vpop.xlane.xlu1 %670 }
 0x387   : > { %1692 = vrcp.f32 %v671_v21 }
 0x391   : > { %v1693_v23 = vpop.eup %1692 }
 0x392   : > { %v673_v25 = vmul.f32 %v1693_v23, %v1685_v62 }
 0x394   : > { %v676_v30 = vsel %vm2293_vm5, 0.0, %v673_v25 }
 0x39f   : > { %575 = vxpose.xlu0.b32.start.end [1/1] (short) (narrow) %v574_v18, 8 }
 0x3ef   : > { %v827_v19 = vpop.xlane.xlu0 %826 }
 0x3f7   : > { %v976_v39 = vpop.xlane.xlu1 %975 }
 0x3fb   : > { %v870_v45 = vpop.permute.xlu1 %869 }
 0x3fc   : > { %v875_v51 = vsel %vm723_vm4, %v870_v45, 0 }
 0x3ff   : > { %v1125_v22 = vpop.xlane.xlu0 %1124  ;;  %v1019_v58 = vpop.permute.xlu1 %1018 }
 0x400   : > { %1694 = vrcp.f32 %v1125_v22  ;;  %v1024_v61 = vsel %vm723_vm4, %v1019_v58, 0 }
 0x401   : > { %1696 = vrcp.f32 %v827_v19 }
 0x403   : > { %v1168_v4 = vpop.permute.xlu1 %1167 }
 0x404   : > { %v1173_v7 = vsel %vm723_vm4, %v1168_v4, 0 }
 0x40a   : > { %v1695_v20 = vpop.eup %1694 }
 0x40b   : > { %v1127_v27 = vmul.f32 %v1695_v20, %v1691_v16  ;;  %v1697_v40 = vpop.eup %1696 }
 0x40c   : > { %v829_v44 = vmul.f32 %v1697_v40, %v1687_v9 }
 0x40d   : > { %v2312_v36 = vsel %vm2293_vm5, 0.0, %v1127_v27 }
 0x40e   : > { %v830_v52 = vsel %vm2293_vm5, 0.0, %v829_v44 }
 0x41f   : > { %v2297_v28 = vpop.trf.xlu0 }
 0x420   : > { %v607_v29 = vmul.f32 -0.6931472, %v2297_v28  ;;  %vm610_vm6 = vcmp.eq.f32.partialorder %v2297_v28, 1.0  ;;  %vm611_vm7 = vcmp.gt.f32.partialorder %v2297_v28, 1.0 }
 0x421   : > { %v690_v31 = vsel %vm611_vm7, %v676_v30, 0.0  ;;  %v678_v32 = vsel %vm610_vm6, %v676_v30, 0.0  ;;  %v1130_v37 = vsel %vm610_vm6, %v2312_v36, 0.0  ;;  %v832_v53 = vsel %vm610_vm6, %v830_v52, 0.0 }
 0x422   : > { %v608_v33 = vmul.f32 1.442695, %v607_v29  ;;  %v691_v34 = vsel %vm662_vm3, %v690_v31, 0.0  ;;  %v679_v35 = vsel %vm662_vm3, %v678_v32, 0.0  ;;  %v1131_v38 = vsel %vm662_vm3, %v1130_v37, 0.0 }
 0x423   : > { %692 = vadd.xlane.f32.xlu0 %v691_v34  ;;  %680 = vadd.xlane.f32.xlu1 %v679_v35  ;;  %v833_v56 = vsel %vm662_vm3, %v832_v53, 0.0  ;;  %v844_v59 = vsel %vm611_vm7, %v830_v52, 0.0 }
 0x424   : > { %1698 = vpow2.f32 %v608_v33  ;;  %v845_v62 = vsel %vm662_vm3, %v844_v59, 0.0 }
 0x425   : > { %1700 = vrcp.f32 %v976_v39 }
 0x427   : > { %1132 = vadd.xlane.f32.xlu0 %v1131_v38 }
 0x42e   : > { %v1699_v41 = vpop.eup %1698 }
 0x42f   : > { %v677_v42 = vmul.f32 %v1699_v41, %v676_v30  ;;  %v1129_v43 = vmul.f32 %v1699_v41, %v2312_v36  ;;  %v1701_v54 = vpop.eup %1700  ;;  %v831_v55 = vmul.f32 %v1699_v41, %v830_v52 }
 0x430   : > { %v978_v57 = vmul.f32 %v1701_v54, %v2271_v14  ;;  %v1142_v14 = vsel %vm611_vm7, %v2312_v36, 0.0 }
 0x431   : > { %v714_v46 = vpack.c.bf16 %v677_v42, %v677_v42  ;;  %v1154_v47 = vsel %vm611_vm7, %v1129_v43, 0.0  ;;  %v702_v48 = vsel %vm611_vm7, %v677_v42, 0.0  ;;  %v868_v60 = vpack.c.bf16 %v831_v55, %v831_v55 }
 0x432   : > { %v1155_v49 = vsel %vm662_vm3, %v1154_v47, 0.0  ;;  %v703_v50 = vsel %vm662_vm3, %v702_v48, 0.0  ;;  %v979_v63 = vsel %vm2293_vm5, 0.0, %v978_v57  ;;  %v856_v1 = vsel %vm611_vm7, %v831_v55, 0.0 }
 0x433   : > { %1523 = vmatmul.mubr.msk.bf16.vlgmr.msra.gmra.mrb[4].mxu1 %vm662_vm3, %v714_v46  ;;  %1156 = vadd.xlane.f32.xlu0 %v1155_v49  ;;  %v980_v2 = vmul.f32 %v1699_v41, %v979_v63  ;;  %v857_v3 = vsel %vm662_vm3, %v856_v1, 0.0  ;;  %v981_v5 = vsel %vm610_vm6, %v979_v63, 0.0  ;;  %v993_v9 = vsel %vm611_vm7, %v979_v63, 0.0 }
 0x434   : > { %1533 = vmatpush3.bf16.msra.mxu1 %v875_v51  ;;  %704 = vadd.xlane.f32.xlu1 %v703_v50  ;;  %v982_v8 = vsel %vm662_vm3, %v981_v5, 0.0  ;;  %v994_v10 = vsel %vm662_vm3, %v993_v9, 0.0  ;;  %v1166_v12 = vpack.c.bf16 %v1129_v43, %v1129_v43  ;;  %v1143_v15 = vsel %vm662_vm3, %v1142_v14, 0.0 }
 0x435   : > { %1534 = vmatprep.mubr.msk.bf16.mxu1 %vm1933_vm0, %v1932_v0  ;;  %1544 = vmatprep.subr.bf16.mxu1 %v1932_v0  ;;  %v1017_v6 = vpack.c.bf16 %v980_v2, %v980_v2  ;;  %v1005_v11 = vsel %vm611_vm7, %v980_v2, 0.0 }
 0x436   : > { %v1006_v13 = vsel %vm662_vm3, %v1005_v11, 0.0 }
 0x438   : > { %834 = vadd.xlane.f32.xlu1 %v833_v56 }
 0x43b   : > { %1535 = vmatmul.mubr.msk.bf16.vlgmr.msra.gmra.mrb[8].mxu1 %vm662_vm3, %v868_v60 }
 0x43c   : > { %1545 = vmatpush3.bf16.msra.mxu1 %v1024_v61  ;;  %846 = vadd.xlane.f32.xlu1 %v845_v62 }
 0x43d   : > { %1546 = vmatprep.mubr.msk.bf16.mxu1 %vm1933_vm0, %v1932_v0  ;;  %1556 = vmatprep.subr.bf16.mxu1 %v1932_v0 }
 0x440   : > { %858 = vadd.xlane.f32.xlu1 %v857_v3 }
 0x443   : > { %1547 = vmatmul.mubr.msk.bf16.vlgmr.msra.gmra.mrb[12].mxu1 %vm662_vm3, %v1017_v6 }
 0x444   : > { %1557 = vmatpush3.bf16.msra.mxu1 %v1173_v7  ;;  %983 = vadd.xlane.f32.xlu1 %v982_v8 }
 0x445   : > { %1558 = vmatprep.mubr.msk.bf16.mxu1 %vm1933_vm0, %v1932_v0 }
 0x448   : > { %995 = vadd.xlane.f32.xlu1 %v994_v10 }
 0x44b   : > { %1559 = vmatmul.mubr.msk.bf16.vlgmr.msra.gmra.mrb[16].mxu1 %vm662_vm3, %v1166_v12 }
 0x44c   : > { %1007 = vadd.xlane.f32.xlu1 %v1006_v13 }
 0x450   : > { %1144 = vadd.xlane.f32.xlu1 %v1143_v15 }
 0x4b0   : > { %v693_v0 = vpop.xlane.xlu0 %692  ;;  %v681_v16 = vpop.xlane.xlu1 %680 }
 0x4b1   : > { %v694_v17 = vrot.slane %v693_v0, 4  ;;  %v682_v18 = vrot.slane %v681_v16, 4 }
 0x4b3   : > { %v695_v19 = vadd.f32 %v694_v17, %v693_v0  ;;  %v683_v21 = vadd.f32 %v682_v18, %v681_v16 }
 0x4b4   : > { %v1133_v46 = vpop.xlane.xlu0 %1132 }
 0x4b5   : > { %v696_v22 = vrot.slane %v695_v19, 2  ;;  %v684_v23 = vrot.slane %v683_v21, 2  ;;  %v1134_v53 = vrot.slane %v1133_v46, 4 }
 0x4b7   : > { %v685_v20 = vadd.f32 %v684_v23, %v683_v21  ;;  %v697_v25 = vadd.f32 %v696_v22, %v695_v19  ;;  %v1135_v62 = vadd.f32 %v1134_v53, %v1133_v46 }
 0x4b9   : > { %v686_v26 = vrot.slane %v685_v20, 1  ;;  %v698_v27 = vrot.slane %v697_v25, 1  ;;  %v1136_v8 = vrot.slane %v1135_v62, 2 }
 0x4bb   : > { %v687_v29 = vadd.f32 %v686_v26, %v685_v20  ;;  %v699_v30 = vadd.f32 %v698_v27, %v697_v25  ;;  %v1137_v18 = vadd.f32 %v1136_v8, %v1135_v62 }
 0x4bd   : > { %1562 = vpush %v687_v29  ;;  %v1138_v26 = vrot.slane %v1137_v18, 1 }
 0x4be   : > { %1564 = vpush %v699_v30 }
 0x4c0   : > { %v1157_v55 = vpop.xlane.xlu0 %1156 }
 0x4c1   : > { %v705_v28 = vpop.xlane.xlu1 %704  ;;  %v1158_v63 = vrot.slane %v1157_v55, 4 }
 0x4c2   : > { %v706_v31 = vrot.slane %v705_v28, 4 }
 0x4c3   : > { %v1159_v9 = vadd.f32 %v1158_v63, %v1157_v55 }
 0x4c4   : > { %v707_v32 = vadd.f32 %v706_v31, %v705_v28 }
 0x4c5   : > { %v835_v33 = vpop.xlane.xlu1 %834  ;;  %v1160_v16 = vrot.slane %v1159_v9, 2 }
 0x4c6   : > { %v708_v34 = vrot.slane %v707_v32, 2  ;;  %v836_v35 = vrot.slane %v835_v33, 4 }
 0x4c7   : > { %v1161_v27 = vadd.f32 %v1160_v16, %v1159_v9 }
 0x4c8   : > { %v837_v36 = vadd.f32 %v836_v35, %v835_v33  ;;  %v709_v37 = vadd.f32 %v708_v34, %v707_v32  ;;  %v1139_v32 = vadd.f32 %v1138_v26, %v1137_v18 }
 0x4c9   : > { %v847_v38 = vpop.xlane.xlu1 %846  ;;  %v1162_v33 = vrot.slane %v1161_v27, 1 }
 0x4ca   : > { %v838_v39 = vrot.slane %v837_v36, 2  ;;  %v848_v40 = vrot.slane %v847_v38, 4  ;;  %v710_v41 = vrot.slane %v709_v37, 1 }
 0x4cc   : > { %v849_v42 = vadd.f32 %v848_v40, %v847_v38  ;;  %v711_v43 = vadd.f32 %v710_v41, %v709_v37  ;;  %v839_v44 = vadd.f32 %v838_v39, %v837_v36  ;;  %v1163_v36 = vadd.f32 %v1162_v33, %v1161_v27 }
 0x4cd   : > { %v859_v45 = vpop.xlane.xlu1 %858 }
 0x4ce   : > { %v850_v47 = vrot.slane %v849_v42, 2  ;;  %v860_v48 = vrot.slane %v859_v45, 4  ;;  %1566 = vpush %v711_v43  ;;  %v840_v49 = vrot.slane %v839_v44, 1 }
 0x4d0   : > { %v861_v50 = vadd.f32 %v860_v48, %v859_v45  ;;  %v841_v51 = vadd.f32 %v840_v49, %v839_v44  ;;  %v851_v52 = vadd.f32 %v850_v47, %v849_v42 }
 0x4d1   : > { %v984_v54 = vpop.xlane.xlu1 %983 }
 0x4d2   : > { %v862_v56 = vrot.slane %v861_v50, 2  ;;  %v985_v57 = vrot.slane %v984_v54, 4  ;;  %1568 = vpush %v841_v51  ;;  %v852_v58 = vrot.slane %v851_v52, 1 }
 0x4d4   : > { %v986_v59 = vadd.f32 %v985_v57, %v984_v54  ;;  %v853_v60 = vadd.f32 %v852_v58, %v851_v52  ;;  %v863_v61 = vadd.f32 %v862_v56, %v861_v50 }
 0x4d5   : > { %v996_v1 = vpop.xlane.xlu1 %995 }
 0x4d6   : > { %v987_v2 = vrot.slane %v986_v59, 2  ;;  %v997_v3 = vrot.slane %v996_v1, 4  ;;  %1570 = vpush %v853_v60  ;;  %v864_v4 = vrot.slane %v863_v61, 1 }
 0x4d8   : > { %v998_v5 = vadd.f32 %v997_v3, %v996_v1  ;;  %v865_v6 = vadd.f32 %v864_v4, %v863_v61  ;;  %v988_v7 = vadd.f32 %v987_v2, %v986_v59 }
 0x4d9   : > { %v1008_v10 = vpop.xlane.xlu1 %1007 }
 0x4da   : > { %v999_v11 = vrot.slane %v998_v5, 2  ;;  %v1009_v12 = vrot.slane %v1008_v10, 4  ;;  %1572 = vpush %v865_v6  ;;  %v989_v13 = vrot.slane %v988_v7, 1 }
 0x4dc   : > { %v1010_v14 = vadd.f32 %v1009_v12, %v1008_v10  ;;  %v990_v15 = vadd.f32 %v989_v13, %v988_v7  ;;  %v1000_v0 = vadd.f32 %v999_v11, %v998_v5 }
 0x4dd   : > { %v1145_v17 = vpop.xlane.xlu1 %1144 }
 0x4de   : > { %v1011_v19 = vrot.slane %v1010_v14, 2  ;;  %v1146_v21 = vrot.slane %v1145_v17, 4  ;;  %1574 = vpush %v990_v15  ;;  %v1001_v22 = vrot.slane %v1000_v0, 1 }
 0x4e0   : > { %v1147_v23 = vadd.f32 %v1146_v21, %v1145_v17  ;;  %v1002_v20 = vadd.f32 %v1001_v22, %v1000_v0  ;;  %v1012_v25 = vadd.f32 %v1011_v19, %v1010_v14 }
 0x4e2   : > { %v1148_v29 = vrot.slane %v1147_v23, 2  ;;  %1576 = vpush %v1002_v20  ;;  %v1013_v30 = vrot.slane %v1012_v25, 1 }
 0x4e4   : > { %v1014_v28 = vadd.f32 %v1013_v30, %v1012_v25  ;;  %v1149_v31 = vadd.f32 %v1148_v29, %v1147_v23 }
 0x4e6   : > { %1578 = vpush %v1014_v28  ;;  %v1150_v34 = vrot.slane %v1149_v31, 1 }
 0x4e7   : > { %1580 = vpush %v1139_v32 }
 0x4e8   : > { %v1151_v35 = vadd.f32 %v1150_v34, %v1149_v31 }
 0x4ea   : > { %1582 = vpush %v1151_v35 }
 0x4eb   : > { %1584 = vpush %v1163_v36 }
 0x4ee   : > { %s1563_s27 = spop %1562 }
 0x4ef   : > { %s1565_s24 = spop %1564 }
 0x4ff   : > { %s1567_s5 = spop %1566 }
 0x503   : > { %s1569_s30 = spop %1568 }
 0x504   : > { %s843_s19 = sadd.f32 %s1569_s30, %s1563_s27  ;;  %s1458_s30 = sshll.u32 %s2181_s13, 3 }
 0x506   : > { %v2367_v37 = vpop.f32.mrb[4].mxu1 }
 0x507   : > { %v1524_v38 = vpop.f32.mrb[5].mxu1  ;;  %s1571_s29 = spop %1570 }
 0x508   : > { %v764_v39 = vpop.f32.mrb[6].mxu1  ;;  %s855_s18 = sadd.f32 %s1571_s29, %s1565_s24 }
 0x509   : > { %v1525_v40 = vpop.f32.mrb[7].mxu1 }
 0x50b   : > { %s1573_s15 = spop %1572 }
 0x50c   : > { %s867_s0 = sadd.f32 %s1573_s15, %s1567_s5 }
 0x50e   : > { %v911_v41 = vpop.f32.mrb[8].mxu1 }
 0x50f   : > { %v1536_v42 = vpop.f32.mrb[9].mxu1  ;;  %1216 = vrot.lane.b32.xlu1 %v911_v41, %s1940_s16  ;;  %s1575_s11 = spop %1574 }
 0x510   : > { %v914_v43 = vpop.f32.mrb[10].mxu1  ;;  %s992_s17 = sadd.f32 %s1575_s11, %s843_s19  ;;  %s1257_s11 = scalar_lea.sflag [#allocation13], %s2181_s13 }
 0x511   : > { %v1537_v44 = vpop.f32.mrb[11].mxu1 }
 0x513   : > { %s1577_s25 = spop %1576 }
 0x514   : > { %s1004_s28 = sadd.f32 %s1577_s25, %s855_s18  ;;  %s1941_s25 = smov [#allocation12]  }
 0x516   : > { %v1060_v45 = vpop.f32.mrb[12].mxu1 }
 0x517   : > { %s1579_s12 = spop %1578  ;;  %v1548_v46 = vpop.f32.mrb[13].mxu1  ;;  %1220 = vrot.lane.b32.xlu0 %v1060_v45, %s1939_s21  ;;  %s2517_s21 = smov 48  }
 0x518   : > { %s1581_s16 = spop %1580  ;;  %v1063_v47 = vpop.f32.mrb[14].mxu1  ;;  %s1016_s14 = sadd.f32 %s1579_s12, %s867_s0 }
 0x519   : > { %s1141_s26 = sadd.f32 %s1581_s16, %s992_s17  ;;  %v1549_v48 = vpop.f32.mrb[15].mxu1  ;;  %s1804_s0 = sshll.u32 %s1941_s25, 4  ;;  %s1805_s0 = int_to_ptr.vmem [resolvable:$false] %s1804_s0 }
 0x51a   : > { %s1806_s17 = scalar_lea.vmem %s1805_s0, 256 }
 0x51b   : > { %s1234_s1 = smul.f32 0.5, %s1141_s26  ;;  %s1583_s2 = spop %1582  ;;  %v1236_v49 = vstv %s1141_s26 }
 0x51c   : > { %s1153_s27 = sadd.f32 %s1583_s2, %s1004_s28  ;;  %s1585_s24 = spop %1584  ;;  %v1237_v53 = vsel %vm1235_vm8, %v1236_v49, 0.0 }
 0x51d   : > { %s1165_s5 = sadd.f32 %s1585_s24, %s1016_s14  ;;  %v1243_v50 = vstv %s1234_s1  ;;  %s1478_s2 = sshll.u32 %s1916_s22, 7 }
 0x51e   : > { %v1239_v51 = vstv %s1153_s27  ;;  %v1209_v52 = vpop.f32.mrb[16].mxu1  ;;  %v1244_v59 = vsel %vm1242_vm10, %v1243_v50, 0.0  ;;  %s427_s1 = scalar_lea.vmem [#allocation12], %s1458_s30  ;;  %s2385_s19 = scalar_lea.hbm %s2478_s9, %s1478_s2 }
 0x51f   : > { %v1240_v54 = vsel %vm1238_vm9, %v1239_v51, 0.0  ;;  %v1560_v55 = vpop.f32.mrb[17].mxu1  ;;  %1224 = vrot.lane.b32.xlu1 %v1209_v52, %s2517_s21  ;;  %v1247_v57 = vstv %s1165_s5  ;;  %s1285_s14 = sshll.u32 %s427_s1, 4  ;;  %s2387_s14 = int_to_ptr.vmem [resolvable:$true] %s1285_s14 }
 0x520   : > { %v1241_v56 = vadd.f32 %v1240_v54, %v1237_v53  ;;  %v1212_v58 = vpop.f32.mrb[18].mxu1  ;;  %v1248_v62 = vsel %vm1246_vm11, %v1247_v57, 0.0  ;;  %s1800_s18 = scalar_lea.vmem %s2387_s14, 128  ;;  %p1807_p5 = scmp.lt.s32.totalorder %s2387_s14, %s1805_s0 }
 0x521   : > { %v1561_v60 = vpop.f32.mrb[19].mxu1  ;;  %p1801_p3 = scmp.ne.s32.totalorder %s2387_s14, %s1800_s18  ;;  %p1808_p10 = scmp.lt.s32.totalorder %s1806_s17, %s1800_s18 }
 0x522   : > { %v1245_v61 = vadd.f32 %v1244_v59, %v1241_v56 }
 0x523   : > { %p1802_p12 = pnand %p1801_p3, %p2518_p8  ;;  %p1809_p7 = por %p1808_p10, %p1807_p5 }
 0x524   : > { %v1249_v63 = vadd.f32 %v1248_v62, %v1245_v61 }
 0x525   : > { %p1803_p4 = pneg %p1802_p12 }
 0x526   : > { %1250 = vst [vmem:[%s427_s1] sm:$0xff] %v1249_v63 }
 0x527   : > { %p1810_p0 = pnand %p1809_p7, %p1803_p4 }
 0x529   : > { %1813 = shalt.err (!%p1810_p0)
}
 0x52a   : > { %s1814_s12 = scalar_lea.hbm %s2385_s19, 128  ;;  %s1818_s26 = scalar_lea.hbm %s2478_s9, 256 }
 0x52b   : > { %p1815_p11 = scmp.ne.s32.totalorder %s2385_s19, %s1814_s12  ;;  %p1819_p13 = scmp.lt.u32.totalorder %s2385_s19, %s2478_s9 }
 0x52c   : > { %p1820_p2 = scmp.lt.u32.totalorder %s1818_s26, %s1814_s12  ;;  %p1822_p3 = scmp.lt.u32.totalorder %s1814_s12, %s2385_s19 }
 0x52d   : > { %p1816_p9 = pnand %p1815_p11, %p2518_p8 }
 0x52e   : > { %p1821_p1 = por %p1820_p2, %p1819_p13 }
 0x52f   : > { %p1817_p6 = pneg %p1816_p9 }
 0x530   : > { %p1823_p12 = por %p1822_p3, %p1821_p1 }
 0x532   : > { %p1824_p4 = pnand %p1823_p12, %p1817_p6 }
 0x534   : > { %1827 = shalt.err (!%p1824_p4)
}
 0x535   : > { %1595 = dma.vmem_to_hbm [thread:$0]  (%p2518_p8), %s2387_s14, 128, %s2385_s19, %s1257_s11   ;;  %vm1228_vm12 = vcmask 261120   ;;  %vm1230_vm13 = vcmask 392192   ;;  %vm1232_vm14 = vcmask 523264  }
 0x536   : > { %s420_s5 = scalar_lea.vmem [#allocation11], %s1458_s30  ;;  %s2420_s15 = scalar_lea.hbm %s2477_s8, %s1478_s2 }
 0x537   : > { %s1271_s21 = sshll.u32 %s420_s5, 4  ;;  %s1252_s30 = scalar_lea.sflag [#allocation7], %s2181_s13  ;;  %s2422_s21 = int_to_ptr.vmem [resolvable:$true] %s1271_s21 }
 0x538   : > { %s1828_s14 = scalar_lea.vmem %s2422_s21, 128  ;;  %s1942_s19 = smov [#allocation11]  }
 0x539   : > { %p1829_p5 = scmp.ne.s32.totalorder %s2422_s21, %s1828_s14  ;;  %s1832_s22 = sshll.u32 %s1942_s19, 4  ;;  %s1833_s22 = int_to_ptr.vmem [resolvable:$false] %s1832_s22 }
 0x53a   : > { %s1834_s11 = scalar_lea.vmem %s1833_s22, 256  ;;  %p1835_p0 = scmp.lt.s32.totalorder %s2422_s21, %s1833_s22 }
 0x53b   : > { %p1830_p10 = pnand %p1829_p5, %p2518_p8  ;;  %p1836_p11 = scmp.lt.s32.totalorder %s1834_s11, %s1828_s14 }
 0x53d   : > { %p1831_p7 = pneg %p1830_p10  ;;  %p1837_p9 = por %p1836_p11, %p1835_p0 }
 0x53f   : > { %p1838_p6 = pnand %p1837_p9, %p1831_p7 }
 0x581   : > { %v1217_v24 = vpop.permute.xlu1 %1216 }
 0x582   : > { %v1227_v2 = vsel %vm457_vm1, %v2367_v37, %v1217_v24 }
 0x589   : > { %v1221_v1 = vpop.permute.xlu0 %1220 }
 0x58a   : > { %v1229_v3 = vsel %vm1228_vm12, %v1227_v2, %v1221_v1 }
 0x591   : > { %v1225_v4 = vpop.permute.xlu1 %1224 }
 0x592   : > { %v1231_v5 = vsel %vm1230_vm13, %v1229_v3, %v1225_v4 }
 0x593   : > { %1233 = vst.msk [vmem:[%s420_s5] sm:$0xff] %vm1232_vm14, %v1231_v5 }
 0x594   : > { %1841 = shalt.err (!%p1838_p6)
}
 0x595   : > { %s1842_s13 = scalar_lea.hbm %s2420_s15, 128  ;;  %s1846_s25 = scalar_lea.hbm %s2477_s8, 256 }
 0x596   : > { %p1843_p13 = scmp.ne.s32.totalorder %s2420_s15, %s1842_s13  ;;  %p1847_p3 = scmp.lt.u32.totalorder %s2420_s15, %s2477_s8 }
 0x597   : > { %p1848_p12 = scmp.lt.u32.totalorder %s1846_s25, %s1842_s13  ;;  %p1850_p5 = scmp.lt.u32.totalorder %s1842_s13, %s2420_s15 }
 0x598   : > { %p1844_p2 = pnand %p1843_p13, %p2518_p8 }
 0x599   : > { %p1849_p4 = por %p1848_p12, %p1847_p3 }
 0x59a   : > { %p1845_p1 = pneg %p1844_p2 }
 0x59b   : > { %p1851_p10 = por %p1850_p5, %p1849_p4 }
 0x59d   : > { %p1852_p7 = pnand %p1851_p10, %p1845_p1 }
 0x59f   : > { %1855 = shalt.err (!%p1852_p7)
}
 0x5a0   : > { %1594 = dma.vmem_to_hbm [thread:$0]  (%p2518_p8), %s2422_s21, 128, %s2420_s15, %s1252_s30  }
 0x5a1 PF: > { %s2519_s12 = sld [smem:[#allocation20_spill]]  ;;  %s2520_s28 = sld [smem:[#allocation23_spill]] }
 0x5a2   : > { %p2522_p11 = scmp.ge.s32.totalorder %s1924_s23, 2 }
 0x5a7   : > { %s1297_s16 = sand.u32 1, %s2519_s12   ;;  %p2521_p0 = scmp.ne.s32.totalorder %s2520_s28, 0 }
 0x5a8   : > { %s1298_s26 = scalar_lea.sflag [#allocation7], %s1297_s16 }
 0x5a9   : > { %p1610_p9 = pnand %p2522_p11, %p2521_p0 }
 0x5ab   : > { %1895 = dma.done.wait (!%p1610_p9), %s1298_s26, 128  }
 0x5ac   : > { %1897 = vsyncadd (!%p1610_p9), %s1298_s26, 4294967168  ;;  %s1307_s27 = scalar_lea.sflag [#allocation13], %s1297_s16 }
 0x5ad   : > { %1899 = dma.done.wait (!%p1610_p9), %s1307_s27, 128  }
 0x5ae   : > { %1901 = vsyncadd (!%p1610_p9), %s1307_s27, 4294967168  ;;  %s36_s23 = sadd.s32 1, %s1924_s23   ;;  %s2523_s10 = sld [smem:[#allocation21_spill]] }
 0x5af   : > { %p33_p6 = scmp.ge.s32.totalorder %s36_s23, 4   ;;  %s2524_s21 = sld [smem:[#allocation25_spill]] }
 0x5b0   : > { %s2525_s22 = sld [smem:[#allocation22_spill]]  ;;  %s2526_s0 = sld [smem:[#allocation24_spill]] }
 0x5b1   : > { %s2527_s19 = smov %s1908_s20  ;;  %35 = sbr.rel (!%p33_p6) target bundleno = 23 (0x17), region = 134 }
 0x5b4   : > { %s2528_s20 = smov %s2523_s10 }
 0x5b8   :  { %1312 = vsyncpa [#allocation6], 1 }
 0x5b9   :  { %1314 = vsyncpa [#allocation6 + $0x1], 1 }
 0x5ba   :  { %1315 = vsyncpa [#allocation9], 1 }
 0x5bb   :  { %1317 = vsyncpa [#allocation9 + $0x1], 1 }
 0x5bc   :  { %1318 = vsyncpa [#allocation7], 1 }
 0x5bd   :  { %1320 = vsyncpa [#allocation7 + $0x1], 1 }
 0x5be   :  { %1321 = vsyncpa [#allocation13], 1 }
 0x5bf   :  { %1323 = vsyncpa [#allocation13 + $0x1], 1 }

</bundles_post_ra>
